<compile_context>
chip_gen: v5e
topology: v5e:2x2
jax: 0.10.0
libtpu: 0.0.40
codegen_flags: <defaults>
</compile_context>

<pallas_src>
import functools

import jax
import jax.numpy as jnp
from jax.experimental import pallas as pl
from jax.experimental.pallas import tpu as pltpu

EPS = 1e-5


def _vmem_limit_bytes():
    """~3/4 of physical VMEM: 96 MiB on v5e/v6e, 48 MiB on v7x, safe fallback."""
    cap = 64 * 1024 * 1024  # conservative fallback (v7x physical per-TC)
    try:
        cap = int(pltpu.get_tpu_info().vmem_capacity_bytes)
    except Exception:
        pass
    return max(32 * 1024 * 1024, min(96 * 1024 * 1024, (cap * 3) // 4))


def _cparams(grid_rank, vmem_limit):
    return pltpu.CompilerParams(
        dimension_semantics=("parallel",) * grid_rank,
        vmem_limit_bytes=vmem_limit,
    )


def _pick_spatial_tile(hw, widest_c, itemsize):
    """Largest lane-dense (multiple-of-128) spatial tile dividing hw, with the
    per-buffer block kept ~<=4 MiB (v7x-safe when double-buffered)."""
    budget = 4 * 1024 * 1024
    for t in (2048, 1024, 512, 256, 128):
        if hw % t == 0 and widest_c * t * itemsize <= budget:
            return t
    for t in (2048, 1024, 512, 256, 128):
        if hw % t == 0:
            return t
    return hw  # tiny feature maps: one spatial tile per image


def _write_stats(h_f32, ps_ref):
    """Per-tile per-channel (sum, sum_sq) from the f32 accumulator.

    ps block is (1, C, 2); two direct sliced stores (no concat)."""
    ps_ref[0, :, 0:1] = jnp.sum(h_f32, axis=1, keepdims=True)
    ps_ref[0, :, 1:2] = jnp.sum(h_f32 * h_f32, axis=1, keepdims=True)


def _finalize_bn(ps, gamma, beta, count):
    """Fold batch stats into per-channel scale/shift: y = h*scale + shift.

    One-pass (E[x^2]-E[x]^2) variance in f32.
    TODO(synk): switch to a Chan/Welford merge of centered per-tile partials if
    cancellation shows up at very large N*H*W."""
    s = jnp.sum(ps[:, :, 0], axis=0)
    ss = jnp.sum(ps[:, :, 1], axis=0)
    mean = s / count
    var = ss / count - mean * mean            # biased (training-mode) variance
    scale = gamma.reshape(-1) * jax.lax.rsqrt(var + EPS)
    shift = beta.reshape(-1) - mean * scale
    return scale[:, None].astype(jnp.float32), shift[:, None].astype(jnp.float32)


# ---------------------------------------------------------------------------
# Stage kernels (channel-major: activations are (C, spatial) tiles)
# ---------------------------------------------------------------------------

def _conv1_kernel(x_ref, w_ref, h_ref, ps_ref):
    # 1x1 conv: (Cout, Cin) @ (Cin, T) on one spatial tile of one image.
    x = x_ref[0].astype(w_ref.dtype)
    h = jnp.dot(w_ref[...], x, preferred_element_type=jnp.float32)   # (C, T) f32
    h_ref[0] = h.astype(h_ref.dtype)
    _write_stats(h, ps_ref)


def _conv2_kernel(W, h1_ref, w_ref, scale_ref, shift_ref, h2_ref, ps_ref):
    # One image per grid step, channel-major (C, H*W). Folded BN1 + ReLU, then
    # 3x3 conv (pad 1) as 9 accumulating (C,C)x(C,HW) matmuls -- one shifted tap
    # live at a time, f32 accumulator (no im2col materialization).
    # TODO(synk): for very large H*W, tile over row strips with a 1-row halo.
    C, HW = h1_ref.shape[1], h1_ref.shape[2]
    cdt = w_ref.dtype
    a = jnp.maximum(
        h1_ref[0].astype(jnp.float32) * scale_ref[...] + shift_ref[...], 0.0
    ).astype(cdt)                                                    # (C, HW)

    # Column index of every spatial position, to mask horizontally-wrapping taps.
    col = jax.lax.broadcasted_iota(jnp.int32, (1, HW), 1) % W
    not_left = col > 0            # dx == -1 valid
    not_right = col < (W - 1)     # dx == +1 valid

    def shifted(d):
        # t[:, s] = a[:, s + d], zero-filled outside [0, HW).
        if d == 0:
            return a
        if d > 0:
            return jnp.concatenate(
                [a[:, d:], jnp.zeros((C, d), a.dtype)], axis=1)
        return jnp.concatenate(
            [jnp.zeros((C, -d), a.dtype), a[:, :HW + d]], axis=1)

    acc = jnp.zeros((C, HW), jnp.float32)
    zero = jnp.zeros((), a.dtype)
    k = 0
    for dy in (-1, 0, 1):
        for dx in (-1, 0, 1):
            t = shifted(dy * W + dx)
            if dx == -1:
                t = jnp.where(not_left, t, zero)
            elif dx == 1:
                t = jnp.where(not_right, t, zero)
            # TODO(synk): on v6e/v7x with C~64, fuse the three dx taps of each dy
            # into one K=3C matmul to better fill the 256-deep MXU.
            acc = acc + jnp.dot(w_ref[k], t, preferred_element_type=jnp.float32)
            k += 1

    h2_ref[0] = acc.astype(h2_ref.dtype)
    _write_stats(acc, ps_ref)


def _conv3_kernel(h2_ref, w_ref, scale_ref, shift_ref, h3_ref, ps_ref):
    a = jnp.maximum(
        h2_ref[0].astype(jnp.float32) * scale_ref[...] + shift_ref[...], 0.0
    ).astype(w_ref.dtype)
    h = jnp.dot(w_ref[...], a, preferred_element_type=jnp.float32)   # (Cexp, T)
    h3_ref[0] = h.astype(h3_ref.dtype)
    _write_stats(h, ps_ref)


def _residual_kernel(h3_ref, x_ref, scale_ref, shift_ref, o_ref):
    y = (h3_ref[0].astype(jnp.float32) * scale_ref[...] + shift_ref[...]
         + x_ref[0].astype(jnp.float32))
    o_ref[0] = jnp.maximum(y, 0.0).astype(o_ref.dtype)


# ---------------------------------------------------------------------------
# Wrapper
# ---------------------------------------------------------------------------

def bottleneck_forward(x_nchw, params, *, compute_dtype=jnp.bfloat16):
    """BottleneckBlock forward (stride=1, downsample=None). NCHW in/out.

    compute_dtype: storage/operand dtype for inter-stage activations + weights
    (matmul accumulation and BN statistics are always float32)."""
    w1, g1, b1, w2, g2, b2, w3, g3, b3 = params
    N, Cin, H, W = x_nchw.shape
    C = w1.shape[1]
    Cexp = w3.shape[1]
    assert Cin == Cexp, "identity residual requires in_channels == 4*out_channels"
    HW = H * W
    M = N * HW
    cdt = compute_dtype
    TS = _pick_spatial_tile(HW, Cexp, jnp.dtype(cdt).itemsize)
    S = HW // TS
    vmem = _vmem_limit_bytes()

    # Channel-major operands: activations live as (N, C, H*W); weights are
    # pre-transposed once so every stage is a plain (Cout, Cin) @ (Cin, T) dot.
    x3 = x_nchw.reshape(N, Cin, HW)                                  # free reshape
    w1t = jnp.transpose(w1).astype(cdt)                              # (C, Cin)
    w2t = jnp.transpose(w2, (0, 1, 3, 2)).reshape(9, C, C).astype(cdt)  # per-tap (Cout, Cin)
    w3t = jnp.transpose(w3).astype(cdt)                              # (Cexp, C)

    def full(arr):   # whole-array block (weights, BN scale/shift)
        return pl.BlockSpec(arr.shape, lambda *_: (0,) * arr.ndim)

    # --- stage 1: conv1 (1x1) + partial BN1 stats ---------------------------
    h1, ps1 = pl.pallas_call(
        _conv1_kernel,
        grid=(N, S),
        in_specs=[pl.BlockSpec((1, Cin, TS), lambda n, s: (n, 0, s)), full(w1t)],
        out_specs=[pl.BlockSpec((1, C, TS), lambda n, s: (n, 0, s)),
                   pl.BlockSpec((1, C, 2), lambda n, s: (n * S + s, 0, 0))],
        out_shape=[jax.ShapeDtypeStruct((N, C, HW), cdt),
                   jax.ShapeDtypeStruct((N * S, C, 2), jnp.float32)],
        compiler_params=_cparams(2, vmem),
    )(x3, w1t)
    scale1, shift1 = _finalize_bn(ps1, g1, b1, M)

    # --- stage 2: BN1+ReLU, conv2 (3x3, pad 1) + partial BN2 stats ----------
    h2, ps2 = pl.pallas_call(
        functools.partial(_conv2_kernel, W),
        grid=(N,),
        in_specs=[pl.BlockSpec((1, C, HW), lambda n: (n, 0, 0)),
                  full(w2t), full(scale1), full(shift1)],
        out_specs=[pl.BlockSpec((1, C, HW), lambda n: (n, 0, 0)),
                   pl.BlockSpec((1, C, 2), lambda n: (n, 0, 0))],
        out_shape=[jax.ShapeDtypeStruct((N, C, HW), cdt),
                   jax.ShapeDtypeStruct((N, C, 2), jnp.float32)],
        compiler_params=_cparams(1, vmem),
    )(h1, w2t, scale1, shift1)
    scale2, shift2 = _finalize_bn(ps2, g2, b2, M)

    # --- stage 3: BN2+ReLU, conv3 (1x1) + partial BN3 stats -----------------
    h3, ps3 = pl.pallas_call(
        _conv3_kernel,
        grid=(N, S),
        in_specs=[pl.BlockSpec((1, C, TS), lambda n, s: (n, 0, s)),
                  full(w3t), full(scale2), full(shift2)],
        out_specs=[pl.BlockSpec((1, Cexp, TS), lambda n, s: (n, 0, s)),
                   pl.BlockSpec((1, Cexp, 2), lambda n, s: (n * S + s, 0, 0))],
        out_shape=[jax.ShapeDtypeStruct((N, Cexp, HW), cdt),
                   jax.ShapeDtypeStruct((N * S, Cexp, 2), jnp.float32)],
        compiler_params=_cparams(2, vmem),
    )(h2, w3t, scale2, shift2)
    scale3, shift3 = _finalize_bn(ps3, g3, b3, M)

    # --- stage 4: BN3 + identity residual + ReLU (writes NCHW directly) -----
    out3 = pl.pallas_call(
        _residual_kernel,
        grid=(N, S),
        in_specs=[pl.BlockSpec((1, Cexp, TS), lambda n, s: (n, 0, s)),
                  pl.BlockSpec((1, Cexp, TS), lambda n, s: (n, 0, s)),
                  full(scale3), full(shift3)],
        out_specs=pl.BlockSpec((1, Cexp, TS), lambda n, s: (n, 0, s)),
        out_shape=jax.ShapeDtypeStruct((N, Cexp, HW), x_nchw.dtype),
        compiler_params=_cparams(2, vmem),
    )(h3, x3, scale3, shift3)

    return out3.reshape(N, Cexp, H, W)


# ---------------------------------------------------------------------------
# Parameters / reference / test
# ---------------------------------------------------------------------------

def init_params(key, in_channels, out_channels, expansion=4):
    """Deterministic synthetic parameters, shapes as in BottleneckBlock."""
    C, Cexp = out_channels, out_channels * expansion
    ks = jax.random.split(key, 6)
    w1 = jax.random.normal(ks[0], (in_channels, C), jnp.float32) * 0.1   # 1x1 (Cin,Cout)
    w2 = jax.random.normal(ks[1], (3, 3, C, C), jnp.float32) * 0.1       # 3x3 HWIO
    w3 = jax.random.normal(ks[2], (C, Cexp), jnp.float32) * 0.1          # 1x1 (Cin,Cout)
    g1 = 1.0 + 0.1 * jax.random.normal(ks[3], (C,), jnp.float32)
    g2 = 1.0 + 0.1 * jax.random.normal(ks[4], (C,), jnp.float32)
    g3 = 1.0 + 0.1 * jax.random.normal(ks[5], (Cexp,), jnp.float32)
    b1 = jnp.zeros((C,), jnp.float32)
    b2 = jnp.zeros((C,), jnp.float32)
    b3 = jnp.zeros((Cexp,), jnp.float32)
    return (w1, g1, b1, w2, g2, b2, w3, g3, b3)


def reference_forward(x_nchw, params):
    """Pure-JAX reference (same semantics) for correctness checking."""
    w1, g1, b1, w2, g2, b2, w3, g3, b3 = params
    x = jnp.transpose(x_nchw, (0, 2, 3, 1))
    dn = ('NHWC', 'HWIO', 'NHWC')

    def bn(h, g, b):
        mean = jnp.mean(h, axis=(0, 1, 2), keepdims=True)
        var = jnp.mean((h - mean) ** 2, axis=(0, 1, 2), keepdims=True)
        return (h - mean) * jax.lax.rsqrt(var + EPS) * g + b

    h = jax.lax.conv_general_dilated(x, w1.reshape(1, 1, *w1.shape), (1, 1),
                                     'VALID', dimension_numbers=dn)
    h = jnp.maximum(bn(h, g1, b1), 0.0)
    h = jax.lax.conv_general_dilated(h, w2, (1, 1), 'SAME',
                                     dimension_numbers=dn)
    h = jnp.maximum(bn(h, g2, b2), 0.0)
    h = jax.lax.conv_general_dilated(h, w3.reshape(1, 1, *w3.shape), (1, 1),
                                     'VALID', dimension_numbers=dn)
    h = jnp.maximum(bn(h, g3, b3) + x, 0.0)
    return jnp.transpose(h, (0, 3, 1, 2))


if __name__ == "__main__":
    key = jax.random.PRNGKey(0)
    k_x, k_p = jax.random.split(key)

    out_channels = 8
    in_channels = out_channels * 4          # identity residual (downsample=None)
    N, H, W = 2, 16, 16

    x = jax.random.normal(k_x, (N, in_channels, H, W), jnp.float32)
    params = init_params(k_p, in_channels, out_channels)
    ref = jax.block_until_ready(reference_forward(x, params))

    # float32 path: tight check of the kernel-pipeline semantics.
    fwd_f32 = jax.jit(functools.partial(bottleneck_forward,
                                        compute_dtype=jnp.float32))
    out_f32 = jax.block_until_ready(fwd_f32(x, params))
    assert out_f32.shape == (N, in_channels, H, W)
    err = float(jnp.max(jnp.abs(out_f32 - ref)))
    assert err < 2e-3, f"f32 mismatch vs pure-JAX reference: {err}"

    # bf16 path (default): halves inter-stage HBM traffic; looser tolerance.
    out_bf16 = jax.block_until_ready(jax.jit(bottleneck_forward)(x, params))
    max_err = float(jnp.max(jnp.abs(out_bf16 - ref)))
    mean_err = float(jnp.mean(jnp.abs(out_bf16 - ref)))
    assert max_err < 2.5e-1 and mean_err < 3e-2, \
        f"bf16 mismatch vs pure-JAX reference: max={max_err} mean={mean_err}"

    print("KERNEL_OK")
</pallas_src>

<mosaic_0001>
module attributes {stable_mosaic.version = 11 : i64} {
  func.func @_conv1_kernel(%arg0: i32, %arg1: i32, %arg2: memref<1x32x256xf32, #tpu.memory_space<vmem>>, %arg3: memref<8x32xf32, #tpu.memory_space<vmem>>, %arg4: memref<1x8x256xf32, #tpu.memory_space<vmem>>, %arg5: memref<1x8x2xf32, #tpu.memory_space<vmem>>) attributes {dimension_semantics = [#tpu.dimension_semantics<parallel>, #tpu.dimension_semantics<parallel>], iteration_bounds = array<i64: 2, 1>, scalar_prefetch = 0 : i64, scratch_operands = 0 : i64, tpu.core_type = #tpu.core_type<tc>, window_params = [{transform_indices = @transform_0, window_bounds = array<i64: 1, 32, 256>}, {pipeline_mode = #tpu.pipeline_mode<synchronous>, transform_indices = @transform_1, window_bounds = array<i64: 8, 32>}, {transform_indices = @transform_2, window_bounds = array<i64: 1, 8, 256>}, {transform_indices = @transform_3, window_bounds = array<i64: 1, 8, 2>}]} {
    %c0 = arith.constant 0 : index
    %c0_0 = arith.constant 0 : index
    %c0_1 = arith.constant 0 : index
    %0 = vector.load %arg2[%c0, %c0_0, %c0_1] : memref<1x32x256xf32, #tpu.memory_space<vmem>>, vector<1x32x256xf32>
    %1 = vector.shape_cast %0 : vector<1x32x256xf32> to vector<32x256xf32>
    %c0_2 = arith.constant 0 : index
    %c0_3 = arith.constant 0 : index
    %2 = vector.load %arg3[%c0_2, %c0_3] : memref<8x32xf32, #tpu.memory_space<vmem>>, vector<8x32xf32>
    %cst = arith.constant dense<0.000000e+00> : vector<8x256xf32>
    %3 = tpu.matmul %2, %1, %cst {dimension_numbers = #tpu.dot_dimension_numbers<[1], [0], [0], [1], [0, 0, 1, 1], [], []>} : vector<8x32xf32>, vector<32x256xf32>, vector<8x256xf32> -> vector<8x256xf32>
    %c0_4 = arith.constant 0 : index
    %c0_5 = arith.constant 0 : index
    %c0_6 = arith.constant 0 : index
    %4 = vector.load %arg4[%c0_4, %c0_5, %c0_6] : memref<1x8x256xf32, #tpu.memory_space<vmem>>, vector<1x8x256xf32>
    %5 = vector.shape_cast %4 : vector<1x8x256xf32> to vector<8x256xf32>
    %6 = vector.shape_cast %3 : vector<8x256xf32> to vector<1x8x256xf32>
    tpu.vector_store %arg4[%c0_4, %c0_5, %c0_6], %6 {strides = array<i32>} : memref<1x8x256xf32, #tpu.memory_space<vmem>>, vector<1x8x256xf32>,
    %cst_7 = arith.constant dense<0.000000e+00> : vector<8xf32>
    %7 = vector.multi_reduction <add>, %3, %cst_7 [1] : vector<8x256xf32> to vector<8xf32>
    %8 = vector.shape_cast %7 : vector<8xf32> to vector<8x1xf32>
    %c0_8 = arith.constant 0 : index
    %c0_9 = arith.constant 0 : index
    %c0_10 = arith.constant 0 : index
    %9 = vector.load %arg5[%c0_8, %c0_9, %c0_10] : memref<1x8x2xf32, #tpu.memory_space<vmem>>, vector<1x8x1xf32>
    %10 = vector.shape_cast %9 : vector<1x8x1xf32> to vector<8x1xf32>
    %11 = vector.shape_cast %8 : vector<8x1xf32> to vector<1x8x1xf32>
    tpu.vector_store %arg5[%c0_8, %c0_9, %c0_10], %11 {strides = array<i32>} : memref<1x8x2xf32, #tpu.memory_space<vmem>>, vector<1x8x1xf32>,
    %12 = arith.mulf %3, %3 : vector<8x256xf32>
    %cst_11 = arith.constant dense<0.000000e+00> : vector<8xf32>
    %13 = vector.multi_reduction <add>, %12, %cst_11 [1] : vector<8x256xf32> to vector<8xf32>
    %14 = vector.shape_cast %13 : vector<8xf32> to vector<8x1xf32>
    %c0_12 = arith.constant 0 : index
    %c0_13 = arith.constant 0 : index
    %c1 = arith.constant 1 : index
    %15 = vector.load %arg5[%c0_12, %c0_13, %c1] : memref<1x8x2xf32, #tpu.memory_space<vmem>>, vector<1x8x1xf32>
    %16 = vector.shape_cast %15 : vector<1x8x1xf32> to vector<8x1xf32>
    %17 = vector.shape_cast %14 : vector<8x1xf32> to vector<1x8x1xf32>
    tpu.vector_store %arg5[%c0_12, %c0_13, %c1], %17 {strides = array<i32>} : memref<1x8x2xf32, #tpu.memory_space<vmem>>, vector<1x8x1xf32>,
    return
  }
  func.func @transform_0(%arg0: i32, %arg1: i32) -> (i32, i32, i32) {
    %c0_i32 = arith.constant 0 : i32
    %c0_i32_0 = arith.constant 0 : i32
    return %arg0, %c0_i32, %arg1 : i32, i32, i32
  }
  func.func @transform_1(%arg0: i32, %arg1: i32) -> (i32, i32) {
    %c0_i32 = arith.constant 0 : i32
    %c0_i32_0 = arith.constant 0 : i32
    %c0_i32_1 = arith.constant 0 : i32
    return %c0_i32, %c0_i32_0 : i32, i32
  }
  func.func @transform_2(%arg0: i32, %arg1: i32) -> (i32, i32, i32) {
    %c0_i32 = arith.constant 0 : i32
    %c0_i32_0 = arith.constant 0 : i32
    return %arg0, %c0_i32, %arg1 : i32, i32, i32
  }
  func.func @transform_3(%arg0: i32, %arg1: i32) -> (i32, i32, i32) {
    %c1_i32 = arith.constant 1 : i32
    %0 = arith.muli %arg0, %c1_i32 : i32
    %1 = arith.addi %0, %arg1 : i32
    %c0_i32 = arith.constant 0 : i32
    %c0_i32_0 = arith.constant 0 : i32
    %c0_i32_1 = arith.constant 0 : i32
    return %1, %c0_i32, %c0_i32_0 : i32, i32, i32
  }
}

module attributes {stable_mosaic.version = 11 : i64} {
  func.func @_conv2_kernel(%arg0: i32, %arg1: memref<1x8x256xf32, #tpu.memory_space<vmem>>, %arg2: memref<9x8x8xf32, #tpu.memory_space<vmem>>, %arg3: memref<8x1xf32, #tpu.memory_space<vmem>>, %arg4: memref<8x1xf32, #tpu.memory_space<vmem>>, %arg5: memref<1x8x256xf32, #tpu.memory_space<vmem>>, %arg6: memref<1x8x2xf32, #tpu.memory_space<vmem>>) attributes {dimension_semantics = [#tpu.dimension_semantics<parallel>], iteration_bounds = array<i64: 2>, scalar_prefetch = 0 : i64, scratch_operands = 0 : i64, tpu.core_type = #tpu.core_type<tc>, window_params = [{transform_indices = @transform_0, window_bounds = array<i64: 1, 8, 256>}, {pipeline_mode = #tpu.pipeline_mode<synchronous>, transform_indices = @transform_1, window_bounds = array<i64: 9, 8, 8>}, {pipeline_mode = #tpu.pipeline_mode<synchronous>, transform_indices = @transform_2, window_bounds = array<i64: 8, 1>}, {pipeline_mode = #tpu.pipeline_mode<synchronous>, transform_indices = @transform_3, window_bounds = array<i64: 8, 1>}, {transform_indices = @transform_4, window_bounds = array<i64: 1, 8, 256>}, {transform_indices = @transform_5, window_bounds = array<i64: 1, 8, 2>}]} {
    %c0 = arith.constant 0 : index
    %c0_0 = arith.constant 0 : index
    %c0_1 = arith.constant 0 : index
    %0 = vector.load %arg1[%c0, %c0_0, %c0_1] : memref<1x8x256xf32, #tpu.memory_space<vmem>>, vector<1x8x256xf32>
    %1 = vector.shape_cast %0 : vector<1x8x256xf32> to vector<8x256xf32>
    %c0_2 = arith.constant 0 : index
    %c0_3 = arith.constant 0 : index
    %2 = vector.load %arg3[%c0_2, %c0_3] : memref<8x1xf32, #tpu.memory_space<vmem>>, vector<8x1xf32>
    %3 = vector.broadcast %2 : vector<8x1xf32> to vector<8x256xf32>
    %4 = arith.mulf %1, %3 : vector<8x256xf32>
    %c0_4 = arith.constant 0 : index
    %c0_5 = arith.constant 0 : index
    %5 = vector.load %arg4[%c0_4, %c0_5] : memref<8x1xf32, #tpu.memory_space<vmem>>, vector<8x1xf32>
    %6 = vector.broadcast %5 : vector<8x1xf32> to vector<8x256xf32>
    %7 = arith.addf %4, %6 : vector<8x256xf32>
    %cst = arith.constant 0.000000e+00 : f32
    %8 = vector.broadcast %cst : f32 to vector<8x256xf32>
    %9 = arith.maximumf %7, %8 : vector<8x256xf32>
    %10 = tpu.iota {dimensions = array<i32: 1>} : vector<1x256xi32>
    %c16_i32 = arith.constant 16 : i32
    %c0_i32 = arith.constant 0 : i32
    %11 = arith.cmpi eq, %c16_i32, %c0_i32 : i32
    %c1_i32 = arith.constant 1 : i32
    %12 = arith.select %11, %c1_i32, %c16_i32 : i32
    %13 = vector.broadcast %12 : i32 to vector<1x256xi32>
    %14 = arith.remsi %10, %13 : vector<1x256xi32>
    %c0_i32_6 = arith.constant 0 : i32
    %15 = vector.broadcast %c0_i32_6 : i32 to vector<1x256xi32>
    %16 = arith.cmpi ne, %14, %15 : vector<1x256xi32>
    %c0_i32_7 = arith.constant 0 : i32
    %17 = vector.broadcast %c0_i32_7 : i32 to vector<1x256xi32>
    %18 = arith.cmpi slt, %14, %17 : vector<1x256xi32>
    %c0_i32_8 = arith.constant 0 : i32
    %19 = arith.cmpi slt, %12, %c0_i32_8 : i32
    %20 = vector.broadcast %19 : i1 to vector<1x256xi1>
    %21 = vector.broadcast %20 : vector<1x256xi1> to vector<1x256xi1>
    %22 = arith.xori %18, %21 : vector<1x256xi1>
    %23 = arith.andi %22, %16 : vector<1x256xi1>
    %24 = vector.broadcast %12 : i32 to vector<1x256xi32>
    %25 = arith.addi %14, %24 : vector<1x256xi32>
    %26 = arith.select %23, %25, %14 : vector<1x256xi1>, vector<1x256xi32>
    %c0_i32_9 = arith.constant 0 : i32
    %27 = vector.broadcast %c0_i32_9 : i32 to vector<1x256xi32>
    %28 = arith.cmpi sgt, %26, %27 : vector<1x256xi32>
    %c15_i32 = arith.constant 15 : i32
    %29 = vector.broadcast %c15_i32 : i32 to vector<1x256xi32>
    %30 = arith.cmpi slt, %26, %29 : vector<1x256xi32>
    %cst_10 = arith.constant 0.000000e+00 : f32
    %31 = vector.broadcast %cst_10 : f32 to vector<8x256xf32>
    %cst_11 = arith.constant 0.000000e+00 : f32
    %32 = vector.broadcast %cst_11 : f32 to vector<8x17xf32>
    %33 = vector.extract_strided_slice %9 {offsets = [0, 0], sizes = [8, 239], strides = [1, 1]} : vector<8x256xf32> to vector<8x239xf32>
    %34 = tpu.concatenate %32, %33 in 1 : vector<8x17xf32>, vector<8x239xf32> -> vector<8x256xf32>
    %cst_12 = arith.constant 0.000000e+00 : f32
    %35 = vector.shape_cast %28 : vector<1x256xi1> to vector<1x256xi1>
    %36 = vector.broadcast %35 : vector<1x256xi1> to vector<8x256xi1>
    %37 = vector.broadcast %cst_12 : f32 to vector<8x256xf32>
    %38 = arith.select %36, %34, %37 : vector<8x256xi1>, vector<8x256xf32>
    %c0_13 = arith.constant 0 : index
    %c0_14 = arith.constant 0 : index
    %c0_15 = arith.constant 0 : index
    %39 = vector.load %arg2[%c0_13, %c0_14, %c0_15] : memref<9x8x8xf32, #tpu.memory_space<vmem>>, vector<1x8x8xf32>
    %40 = vector.shape_cast %39 : vector<1x8x8xf32> to vector<8x8xf32>
    %cst_16 = arith.constant dense<0.000000e+00> : vector<8x256xf32>
    %41 = tpu.matmul %40, %38, %cst_16 {dimension_numbers = #tpu.dot_dimension_numbers<[1], [0], [0], [1], [0, 0, 1, 1], [], []>} : vector<8x8xf32>, vector<8x256xf32>, vector<8x256xf32> -> vector<8x256xf32>
    %42 = arith.addf %31, %41 : vector<8x256xf32>
    %cst_17 = arith.constant 0.000000e+00 : f32
    %43 = vector.broadcast %cst_17 : f32 to vector<8x16xf32>
    %44 = vector.extract_strided_slice %9 {offsets = [0, 0], sizes = [8, 240], strides = [1, 1]} : vector<8x256xf32> to vector<8x240xf32>
    %45 = tpu.concatenate %43, %44 in 1 : vector<8x16xf32>, vector<8x240xf32> -> vector<8x256xf32>
    %c1 = arith.constant 1 : index
    %c0_18 = arith.constant 0 : index
    %c0_19 = arith.constant 0 : index
    %46 = vector.load %arg2[%c1, %c0_18, %c0_19] : memref<9x8x8xf32, #tpu.memory_space<vmem>>, vector<1x8x8xf32>
    %47 = vector.shape_cast %46 : vector<1x8x8xf32> to vector<8x8xf32>
    %cst_20 = arith.constant dense<0.000000e+00> : vector<8x256xf32>
    %48 = tpu.matmul %47, %45, %cst_20 {dimension_numbers = #tpu.dot_dimension_numbers<[1], [0], [0], [1], [0, 0, 1, 1], [], []>} : vector<8x8xf32>, vector<8x256xf32>, vector<8x256xf32> -> vector<8x256xf32>
    %49 = arith.addf %42, %48 : vector<8x256xf32>
    %cst_21 = arith.constant 0.000000e+00 : f32
    %50 = vector.broadcast %cst_21 : f32 to vector<8x15xf32>
    %51 = vector.extract_strided_slice %9 {offsets = [0, 0], sizes = [8, 241], strides = [1, 1]} : vector<8x256xf32> to vector<8x241xf32>
    %52 = tpu.concatenate %50, %51 in 1 : vector<8x15xf32>, vector<8x241xf32> -> vector<8x256xf32>
    %cst_22 = arith.constant 0.000000e+00 : f32
    %53 = vector.shape_cast %30 : vector<1x256xi1> to vector<1x256xi1>
    %54 = vector.broadcast %53 : vector<1x256xi1> to vector<8x256xi1>
    %55 = vector.broadcast %cst_22 : f32 to vector<8x256xf32>
    %56 = arith.select %54, %52, %55 : vector<8x256xi1>, vector<8x256xf32>
    %c2 = arith.constant 2 : index
    %c0_23 = arith.constant 0 : index
    %c0_24 = arith.constant 0 : index
    %57 = vector.load %arg2[%c2, %c0_23, %c0_24] : memref<9x8x8xf32, #tpu.memory_space<vmem>>, vector<1x8x8xf32>
    %58 = vector.shape_cast %57 : vector<1x8x8xf32> to vector<8x8xf32>
    %cst_25 = arith.constant dense<0.000000e+00> : vector<8x256xf32>
    %59 = tpu.matmul %58, %56, %cst_25 {dimension_numbers = #tpu.dot_dimension_numbers<[1], [0], [0], [1], [0, 0, 1, 1], [], []>} : vector<8x8xf32>, vector<8x256xf32>, vector<8x256xf32> -> vector<8x256xf32>
    %60 = arith.addf %49, %59 : vector<8x256xf32>
    %cst_26 = arith.constant 0.000000e+00 : f32
    %61 = vector.broadcast %cst_26 : f32 to vector<8x1xf32>
    %62 = vector.extract_strided_slice %9 {offsets = [0, 0], sizes = [8, 255], strides = [1, 1]} : vector<8x256xf32> to vector<8x255xf32>
    %63 = tpu.concatenate %61, %62 in 1 : vector<8x1xf32>, vector<8x255xf32> -> vector<8x256xf32>
    %cst_27 = arith.constant 0.000000e+00 : f32
    %64 = vector.shape_cast %28 : vector<1x256xi1> to vector<1x256xi1>
    %65 = vector.broadcast %64 : vector<1x256xi1> to vector<8x256xi1>
    %66 = vector.broadcast %cst_27 : f32 to vector<8x256xf32>
    %67 = arith.select %65, %63, %66 : vector<8x256xi1>, vector<8x256xf32>
    %c3 = arith.constant 3 : index
    %c0_28 = arith.constant 0 : index
    %c0_29 = arith.constant 0 : index
    %68 = vector.load %arg2[%c3, %c0_28, %c0_29] : memref<9x8x8xf32, #tpu.memory_space<vmem>>, vector<1x8x8xf32>
    %69 = vector.shape_cast %68 : vector<1x8x8xf32> to vector<8x8xf32>
    %cst_30 = arith.constant dense<0.000000e+00> : vector<8x256xf32>
    %70 = tpu.matmul %69, %67, %cst_30 {dimension_numbers = #tpu.dot_dimension_numbers<[1], [0], [0], [1], [0, 0, 1, 1], [], []>} : vector<8x8xf32>, vector<8x256xf32>, vector<8x256xf32> -> vector<8x256xf32>
    %71 = arith.addf %60, %70 : vector<8x256xf32>
    %c4 = arith.constant 4 : index
    %c0_31 = arith.constant 0 : index
    %c0_32 = arith.constant 0 : index
    %72 = vector.load %arg2[%c4, %c0_31, %c0_32] : memref<9x8x8xf32, #tpu.memory_space<vmem>>, vector<1x8x8xf32>
    %73 = vector.shape_cast %72 : vector<1x8x8xf32> to vector<8x8xf32>
    %cst_33 = arith.constant dense<0.000000e+00> : vector<8x256xf32>
    %74 = tpu.matmul %73, %9, %cst_33 {dimension_numbers = #tpu.dot_dimension_numbers<[1], [0], [0], [1], [0, 0, 1, 1], [], []>} : vector<8x8xf32>, vector<8x256xf32>, vector<8x256xf32> -> vector<8x256xf32>
    %75 = arith.addf %71, %74 : vector<8x256xf32>
    %76 = vector.extract_strided_slice %9 {offsets = [0, 1], sizes = [8, 255], strides = [1, 1]} : vector<8x256xf32> to vector<8x255xf32>
    %cst_34 = arith.constant 0.000000e+00 : f32
    %77 = vector.broadcast %cst_34 : f32 to vector<8x1xf32>
    %78 = tpu.concatenate %76, %77 in 1 : vector<8x255xf32>, vector<8x1xf32> -> vector<8x256xf32>
    %cst_35 = arith.constant 0.000000e+00 : f32
    %79 = vector.shape_cast %30 : vector<1x256xi1> to vector<1x256xi1>
    %80 = vector.broadcast %79 : vector<1x256xi1> to vector<8x256xi1>
    %81 = vector.broadcast %cst_35 : f32 to vector<8x256xf32>
    %82 = arith.select %80, %78, %81 : vector<8x256xi1>, vector<8x256xf32>
    %c5 = arith.constant 5 : index
    %c0_36 = arith.constant 0 : index
    %c0_37 = arith.constant 0 : index
    %83 = vector.load %arg2[%c5, %c0_36, %c0_37] : memref<9x8x8xf32, #tpu.memory_space<vmem>>, vector<1x8x8xf32>
    %84 = vector.shape_cast %83 : vector<1x8x8xf32> to vector<8x8xf32>
    %cst_38 = arith.constant dense<0.000000e+00> : vector<8x256xf32>
    %85 = tpu.matmul %84, %82, %cst_38 {dimension_numbers = #tpu.dot_dimension_numbers<[1], [0], [0], [1], [0, 0, 1, 1], [], []>} : vector<8x8xf32>, vector<8x256xf32>, vector<8x256xf32> -> vector<8x256xf32>
    %86 = arith.addf %75, %85 : vector<8x256xf32>
    %87 = vector.extract_strided_slice %9 {offsets = [0, 15], sizes = [8, 241], strides = [1, 1]} : vector<8x256xf32> to vector<8x241xf32>
    %cst_39 = arith.constant 0.000000e+00 : f32
    %88 = vector.broadcast %cst_39 : f32 to vector<8x15xf32>
    %89 = tpu.concatenate %87, %88 in 1 : vector<8x241xf32>, vector<8x15xf32> -> vector<8x256xf32>
    %cst_40 = arith.constant 0.000000e+00 : f32
    %90 = vector.shape_cast %28 : vector<1x256xi1> to vector<1x256xi1>
    %91 = vector.broadcast %90 : vector<1x256xi1> to vector<8x256xi1>
    %92 = vector.broadcast %cst_40 : f32 to vector<8x256xf32>
    %93 = arith.select %91, %89, %92 : vector<8x256xi1>, vector<8x256xf32>
    %c6 = arith.constant 6 : index
    %c0_41 = arith.constant 0 : index
    %c0_42 = arith.constant 0 : index
    %94 = vector.load %arg2[%c6, %c0_41, %c0_42] : memref<9x8x8xf32, #tpu.memory_space<vmem>>, vector<1x8x8xf32>
    %95 = vector.shape_cast %94 : vector<1x8x8xf32> to vector<8x8xf32>
    %cst_43 = arith.constant dense<0.000000e+00> : vector<8x256xf32>
    %96 = tpu.matmul %95, %93, %cst_43 {dimension_numbers = #tpu.dot_dimension_numbers<[1], [0], [0], [1], [0, 0, 1, 1], [], []>} : vector<8x8xf32>, vector<8x256xf32>, vector<8x256xf32> -> vector<8x256xf32>
    %97 = arith.addf %86, %96 : vector<8x256xf32>
    %98 = vector.extract_strided_slice %9 {offsets = [0, 16], sizes = [8, 240], strides = [1, 1]} : vector<8x256xf32> to vector<8x240xf32>
    %cst_44 = arith.constant 0.000000e+00 : f32
    %99 = vector.broadcast %cst_44 : f32 to vector<8x16xf32>
    %100 = tpu.concatenate %98, %99 in 1 : vector<8x240xf32>, vector<8x16xf32> -> vector<8x256xf32>
    %c7 = arith.constant 7 : index
    %c0_45 = arith.constant 0 : index
    %c0_46 = arith.constant 0 : index
    %101 = vector.load %arg2[%c7, %c0_45, %c0_46] : memref<9x8x8xf32, #tpu.memory_space<vmem>>, vector<1x8x8xf32>
    %102 = vector.shape_cast %101 : vector<1x8x8xf32> to vector<8x8xf32>
    %cst_47 = arith.constant dense<0.000000e+00> : vector<8x256xf32>
    %103 = tpu.matmul %102, %100, %cst_47 {dimension_numbers = #tpu.dot_dimension_numbers<[1], [0], [0], [1], [0, 0, 1, 1], [], []>} : vector<8x8xf32>, vector<8x256xf32>, vector<8x256xf32> -> vector<8x256xf32>
    %104 = arith.addf %97, %103 : vector<8x256xf32>
    %105 = vector.extract_strided_slice %9 {offsets = [0, 17], sizes = [8, 239], strides = [1, 1]} : vector<8x256xf32> to vector<8x239xf32>
    %cst_48 = arith.constant 0.000000e+00 : f32
    %106 = vector.broadcast %cst_48 : f32 to vector<8x17xf32>
    %107 = tpu.concatenate %105, %106 in 1 : vector<8x239xf32>, vector<8x17xf32> -> vector<8x256xf32>
    %cst_49 = arith.constant 0.000000e+00 : f32
    %108 = vector.shape_cast %30 : vector<1x256xi1> to vector<1x256xi1>
    %109 = vector.broadcast %108 : vector<1x256xi1> to vector<8x256xi1>
    %110 = vector.broadcast %cst_49 : f32 to vector<8x256xf32>
    %111 = arith.select %109, %107, %110 : vector<8x256xi1>, vector<8x256xf32>
    %c8 = arith.constant 8 : index
    %c0_50 = arith.constant 0 : index
    %c0_51 = arith.constant 0 : index
    %112 = vector.load %arg2[%c8, %c0_50, %c0_51] : memref<9x8x8xf32, #tpu.memory_space<vmem>>, vector<1x8x8xf32>
    %113 = vector.shape_cast %112 : vector<1x8x8xf32> to vector<8x8xf32>
    %cst_52 = arith.constant dense<0.000000e+00> : vector<8x256xf32>
    %114 = tpu.matmul %113, %111, %cst_52 {dimension_numbers = #tpu.dot_dimension_numbers<[1], [0], [0], [1], [0, 0, 1, 1], [], []>} : vector<8x8xf32>, vector<8x256xf32>, vector<8x256xf32> -> vector<8x256xf32>
    %115 = arith.addf %104, %114 : vector<8x256xf32>
    %c0_53 = arith.constant 0 : index
    %c0_54 = arith.constant 0 : index
    %c0_55 = arith.constant 0 : index
    %116 = vector.load %arg5[%c0_53, %c0_54, %c0_55] : memref<1x8x256xf32, #tpu.memory_space<vmem>>, vector<1x8x256xf32>
    %117 = vector.shape_cast %116 : vector<1x8x256xf32> to vector<8x256xf32>
    %118 = vector.shape_cast %115 : vector<8x256xf32> to vector<1x8x256xf32>
    tpu.vector_store %arg5[%c0_53, %c0_54, %c0_55], %118 {strides = array<i32>} : memref<1x8x256xf32, #tpu.memory_space<vmem>>, vector<1x8x256xf32>,
    %cst_56 = arith.constant dense<0.000000e+00> : vector<8xf32>
    %119 = vector.multi_reduction <add>, %115, %cst_56 [1] : vector<8x256xf32> to vector<8xf32>
    %120 = vector.shape_cast %119 : vector<8xf32> to vector<8x1xf32>
    %c0_57 = arith.constant 0 : index
    %c0_58 = arith.constant 0 : index
    %c0_59 = arith.constant 0 : index
    %121 = vector.load %arg6[%c0_57, %c0_58, %c0_59] : memref<1x8x2xf32, #tpu.memory_space<vmem>>, vector<1x8x1xf32>
    %122 = vector.shape_cast %121 : vector<1x8x1xf32> to vector<8x1xf32>
    %123 = vector.shape_cast %120 : vector<8x1xf32> to vector<1x8x1xf32>
    tpu.vector_store %arg6[%c0_57, %c0_58, %c0_59], %123 {strides = array<i32>} : memref<1x8x2xf32, #tpu.memory_space<vmem>>, vector<1x8x1xf32>,
    %124 = arith.mulf %115, %115 : vector<8x256xf32>
    %cst_60 = arith.constant dense<0.000000e+00> : vector<8xf32>
    %125 = vector.multi_reduction <add>, %124, %cst_60 [1] : vector<8x256xf32> to vector<8xf32>
    %126 = vector.shape_cast %125 : vector<8xf32> to vector<8x1xf32>
    %c0_61 = arith.constant 0 : index
    %c0_62 = arith.constant 0 : index
    %c1_63 = arith.constant 1 : index
    %127 = vector.load %arg6[%c0_61, %c0_62, %c1_63] : memref<1x8x2xf32, #tpu.memory_space<vmem>>, vector<1x8x1xf32>
    %128 = vector.shape_cast %127 : vector<1x8x1xf32> to vector<8x1xf32>
    %129 = vector.shape_cast %126 : vector<8x1xf32> to vector<1x8x1xf32>
    tpu.vector_store %arg6[%c0_61, %c0_62, %c1_63], %129 {strides = array<i32>} : memref<1x8x2xf32, #tpu.memory_space<vmem>>, vector<1x8x1xf32>,
    return
  }
  func.func @transform_0(%arg0: i32) -> (i32, i32, i32) {
    %c0_i32 = arith.constant 0 : i32
    %c0_i32_0 = arith.constant 0 : i32
    %c0_i32_1 = arith.constant 0 : i32
    return %arg0, %c0_i32, %c0_i32_0 : i32, i32, i32
  }
  func.func @transform_1(%arg0: i32) -> (i32, i32, i32) {
    %c0_i32 = arith.constant 0 : i32
    %c0_i32_0 = arith.constant 0 : i32
    %c0_i32_1 = arith.constant 0 : i32
    %c0_i32_2 = arith.constant 0 : i32
    return %c0_i32, %c0_i32_0, %c0_i32_1 : i32, i32, i32
  }
  func.func @transform_2(%arg0: i32) -> (i32, i32) {
    %c0_i32 = arith.constant 0 : i32
    %c0_i32_0 = arith.constant 0 : i32
    %c0_i32_1 = arith.constant 0 : i32
    return %c0_i32, %c0_i32_0 : i32, i32
  }
  func.func @transform_3(%arg0: i32) -> (i32, i32) {
    %c0_i32 = arith.constant 0 : i32
    %c0_i32_0 = arith.constant 0 : i32
    %c0_i32_1 = arith.constant 0 : i32
    return %c0_i32, %c0_i32_0 : i32, i32
  }
  func.func @transform_4(%arg0: i32) -> (i32, i32, i32) {
    %c0_i32 = arith.constant 0 : i32
    %c0_i32_0 = arith.constant 0 : i32
    %c0_i32_1 = arith.constant 0 : i32
    return %arg0, %c0_i32, %c0_i32_0 : i32, i32, i32
  }
  func.func @transform_5(%arg0: i32) -> (i32, i32, i32) {
    %c0_i32 = arith.constant 0 : i32
    %c0_i32_0 = arith.constant 0 : i32
    %c0_i32_1 = arith.constant 0 : i32
    return %arg0, %c0_i32, %c0_i32_0 : i32, i32, i32
  }
}

module attributes {stable_mosaic.version = 11 : i64} {
  func.func @_conv3_kernel(%arg0: i32, %arg1: i32, %arg2: memref<1x8x256xf32, #tpu.memory_space<vmem>>, %arg3: memref<32x8xf32, #tpu.memory_space<vmem>>, %arg4: memref<8x1xf32, #tpu.memory_space<vmem>>, %arg5: memref<8x1xf32, #tpu.memory_space<vmem>>, %arg6: memref<1x32x256xf32, #tpu.memory_space<vmem>>, %arg7: memref<1x32x2xf32, #tpu.memory_space<vmem>>) attributes {dimension_semantics = [#tpu.dimension_semantics<parallel>, #tpu.dimension_semantics<parallel>], iteration_bounds = array<i64: 2, 1>, scalar_prefetch = 0 : i64, scratch_operands = 0 : i64, tpu.core_type = #tpu.core_type<tc>, window_params = [{transform_indices = @transform_0, window_bounds = array<i64: 1, 8, 256>}, {pipeline_mode = #tpu.pipeline_mode<synchronous>, transform_indices = @transform_1, window_bounds = array<i64: 32, 8>}, {pipeline_mode = #tpu.pipeline_mode<synchronous>, transform_indices = @transform_2, window_bounds = array<i64: 8, 1>}, {pipeline_mode = #tpu.pipeline_mode<synchronous>, transform_indices = @transform_3, window_bounds = array<i64: 8, 1>}, {transform_indices = @transform_4, window_bounds = array<i64: 1, 32, 256>}, {transform_indices = @transform_5, window_bounds = array<i64: 1, 32, 2>}]} {
    %c0 = arith.constant 0 : index
    %c0_0 = arith.constant 0 : index
    %c0_1 = arith.constant 0 : index
    %0 = vector.load %arg2[%c0, %c0_0, %c0_1] : memref<1x8x256xf32, #tpu.memory_space<vmem>>, vector<1x8x256xf32>
    %1 = vector.shape_cast %0 : vector<1x8x256xf32> to vector<8x256xf32>
    %c0_2 = arith.constant 0 : index
    %c0_3 = arith.constant 0 : index
    %2 = vector.load %arg4[%c0_2, %c0_3] : memref<8x1xf32, #tpu.memory_space<vmem>>, vector<8x1xf32>
    %3 = vector.broadcast %2 : vector<8x1xf32> to vector<8x256xf32>
    %4 = arith.mulf %1, %3 : vector<8x256xf32>
    %c0_4 = arith.constant 0 : index
    %c0_5 = arith.constant 0 : index
    %5 = vector.load %arg5[%c0_4, %c0_5] : memref<8x1xf32, #tpu.memory_space<vmem>>, vector<8x1xf32>
    %6 = vector.broadcast %5 : vector<8x1xf32> to vector<8x256xf32>
    %7 = arith.addf %4, %6 : vector<8x256xf32>
    %cst = arith.constant 0.000000e+00 : f32
    %8 = vector.broadcast %cst : f32 to vector<8x256xf32>
    %9 = arith.maximumf %7, %8 : vector<8x256xf32>
    %c0_6 = arith.constant 0 : index
    %c0_7 = arith.constant 0 : index
    %10 = vector.load %arg3[%c0_6, %c0_7] : memref<32x8xf32, #tpu.memory_space<vmem>>, vector<32x8xf32>
    %cst_8 = arith.constant dense<0.000000e+00> : vector<32x256xf32>
    %11 = tpu.matmul %10, %9, %cst_8 {dimension_numbers = #tpu.dot_dimension_numbers<[1], [0], [0], [1], [0, 0, 1, 1], [], []>} : vector<32x8xf32>, vector<8x256xf32>, vector<32x256xf32> -> vector<32x256xf32>
    %c0_9 = arith.constant 0 : index
    %c0_10 = arith.constant 0 : index
    %c0_11 = arith.constant 0 : index
    %12 = vector.load %arg6[%c0_9, %c0_10, %c0_11] : memref<1x32x256xf32, #tpu.memory_space<vmem>>, vector<1x32x256xf32>
    %13 = vector.shape_cast %12 : vector<1x32x256xf32> to vector<32x256xf32>
    %14 = vector.shape_cast %11 : vector<32x256xf32> to vector<1x32x256xf32>
    tpu.vector_store %arg6[%c0_9, %c0_10, %c0_11], %14 {strides = array<i32>} : memref<1x32x256xf32, #tpu.memory_space<vmem>>, vector<1x32x256xf32>,
    %cst_12 = arith.constant dense<0.000000e+00> : vector<32xf32>
    %15 = vector.multi_reduction <add>, %11, %cst_12 [1] : vector<32x256xf32> to vector<32xf32>
    %16 = vector.shape_cast %15 : vector<32xf32> to vector<32x1xf32>
    %c0_13 = arith.constant 0 : index
    %c0_14 = arith.constant 0 : index
    %c0_15 = arith.constant 0 : index
    %17 = vector.load %arg7[%c0_13, %c0_14, %c0_15] : memref<1x32x2xf32, #tpu.memory_space<vmem>>, vector<1x32x1xf32>
    %18 = vector.shape_cast %17 : vector<1x32x1xf32> to vector<32x1xf32>
    %19 = vector.shape_cast %16 : vector<32x1xf32> to vector<1x32x1xf32>
    tpu.vector_store %arg7[%c0_13, %c0_14, %c0_15], %19 {strides = array<i32>} : memref<1x32x2xf32, #tpu.memory_space<vmem>>, vector<1x32x1xf32>,
    %20 = arith.mulf %11, %11 : vector<32x256xf32>
    %cst_16 = arith.constant dense<0.000000e+00> : vector<32xf32>
    %21 = vector.multi_reduction <add>, %20, %cst_16 [1] : vector<32x256xf32> to vector<32xf32>
    %22 = vector.shape_cast %21 : vector<32xf32> to vector<32x1xf32>
    %c0_17 = arith.constant 0 : index
    %c0_18 = arith.constant 0 : index
    %c1 = arith.constant 1 : index
    %23 = vector.load %arg7[%c0_17, %c0_18, %c1] : memref<1x32x2xf32, #tpu.memory_space<vmem>>, vector<1x32x1xf32>
    %24 = vector.shape_cast %23 : vector<1x32x1xf32> to vector<32x1xf32>
    %25 = vector.shape_cast %22 : vector<32x1xf32> to vector<1x32x1xf32>
    tpu.vector_store %arg7[%c0_17, %c0_18, %c1], %25 {strides = array<i32>} : memref<1x32x2xf32, #tpu.memory_space<vmem>>, vector<1x32x1xf32>,
    return
  }
  func.func @transform_0(%arg0: i32, %arg1: i32) -> (i32, i32, i32) {
    %c0_i32 = arith.constant 0 : i32
    %c0_i32_0 = arith.constant 0 : i32
    return %arg0, %c0_i32, %arg1 : i32, i32, i32
  }
  func.func @transform_1(%arg0: i32, %arg1: i32) -> (i32, i32) {
    %c0_i32 = arith.constant 0 : i32
    %c0_i32_0 = arith.constant 0 : i32
    %c0_i32_1 = arith.constant 0 : i32
    return %c0_i32, %c0_i32_0 : i32, i32
  }
  func.func @transform_2(%arg0: i32, %arg1: i32) -> (i32, i32) {
    %c0_i32 = arith.constant 0 : i32
    %c0_i32_0 = arith.constant 0 : i32
    %c0_i32_1 = arith.constant 0 : i32
    return %c0_i32, %c0_i32_0 : i32, i32
  }
  func.func @transform_3(%arg0: i32, %arg1: i32) -> (i32, i32) {
    %c0_i32 = arith.constant 0 : i32
    %c0_i32_0 = arith.constant 0 : i32
    %c0_i32_1 = arith.constant 0 : i32
    return %c0_i32, %c0_i32_0 : i32, i32
  }
  func.func @transform_4(%arg0: i32, %arg1: i32) -> (i32, i32, i32) {
    %c0_i32 = arith.constant 0 : i32
    %c0_i32_0 = arith.constant 0 : i32
    return %arg0, %c0_i32, %arg1 : i32, i32, i32
  }
  func.func @transform_5(%arg0: i32, %arg1: i32) -> (i32, i32, i32) {
    %c1_i32 = arith.constant 1 : i32
    %0 = arith.muli %arg0, %c1_i32 : i32
    %1 = arith.addi %0, %arg1 : i32
    %c0_i32 = arith.constant 0 : i32
    %c0_i32_0 = arith.constant 0 : i32
    %c0_i32_1 = arith.constant 0 : i32
    return %1, %c0_i32, %c0_i32_0 : i32, i32, i32
  }
}

module attributes {stable_mosaic.version = 11 : i64} {
  func.func @_residual_kernel(%arg0: i32, %arg1: i32, %arg2: memref<1x32x256xf32, #tpu.memory_space<vmem>>, %arg3: memref<1x32x256xf32, #tpu.memory_space<vmem>>, %arg4: memref<32x1xf32, #tpu.memory_space<vmem>>, %arg5: memref<32x1xf32, #tpu.memory_space<vmem>>, %arg6: memref<1x32x256xf32, #tpu.memory_space<vmem>>) attributes {dimension_semantics = [#tpu.dimension_semantics<parallel>, #tpu.dimension_semantics<parallel>], iteration_bounds = array<i64: 2, 1>, scalar_prefetch = 0 : i64, scratch_operands = 0 : i64, tpu.core_type = #tpu.core_type<tc>, window_params = [{transform_indices = @transform_0, window_bounds = array<i64: 1, 32, 256>}, {transform_indices = @transform_1, window_bounds = array<i64: 1, 32, 256>}, {pipeline_mode = #tpu.pipeline_mode<synchronous>, transform_indices = @transform_2, window_bounds = array<i64: 32, 1>}, {pipeline_mode = #tpu.pipeline_mode<synchronous>, transform_indices = @transform_3, window_bounds = array<i64: 32, 1>}, {transform_indices = @transform_4, window_bounds = array<i64: 1, 32, 256>}]} {
    %c0 = arith.constant 0 : index
    %c0_0 = arith.constant 0 : index
    %c0_1 = arith.constant 0 : index
    %0 = vector.load %arg2[%c0, %c0_0, %c0_1] : memref<1x32x256xf32, #tpu.memory_space<vmem>>, vector<1x32x256xf32>
    %1 = vector.shape_cast %0 : vector<1x32x256xf32> to vector<32x256xf32>
    %c0_2 = arith.constant 0 : index
    %c0_3 = arith.constant 0 : index
    %2 = vector.load %arg4[%c0_2, %c0_3] : memref<32x1xf32, #tpu.memory_space<vmem>>, vector<32x1xf32>
    %3 = vector.broadcast %2 : vector<32x1xf32> to vector<32x256xf32>
    %4 = arith.mulf %1, %3 : vector<32x256xf32>
    %c0_4 = arith.constant 0 : index
    %c0_5 = arith.constant 0 : index
    %5 = vector.load %arg5[%c0_4, %c0_5] : memref<32x1xf32, #tpu.memory_space<vmem>>, vector<32x1xf32>
    %6 = vector.broadcast %5 : vector<32x1xf32> to vector<32x256xf32>
    %7 = arith.addf %4, %6 : vector<32x256xf32>
    %c0_6 = arith.constant 0 : index
    %c0_7 = arith.constant 0 : index
    %c0_8 = arith.constant 0 : index
    %8 = vector.load %arg3[%c0_6, %c0_7, %c0_8] : memref<1x32x256xf32, #tpu.memory_space<vmem>>, vector<1x32x256xf32>
    %9 = vector.shape_cast %8 : vector<1x32x256xf32> to vector<32x256xf32>
    %10 = arith.addf %7, %9 : vector<32x256xf32>
    %cst = arith.constant 0.000000e+00 : f32
    %11 = vector.broadcast %cst : f32 to vector<32x256xf32>
    %12 = arith.maximumf %10, %11 : vector<32x256xf32>
    %c0_9 = arith.constant 0 : index
    %c0_10 = arith.constant 0 : index
    %c0_11 = arith.constant 0 : index
    %13 = vector.load %arg6[%c0_9, %c0_10, %c0_11] : memref<1x32x256xf32, #tpu.memory_space<vmem>>, vector<1x32x256xf32>
    %14 = vector.shape_cast %13 : vector<1x32x256xf32> to vector<32x256xf32>
    %15 = vector.shape_cast %12 : vector<32x256xf32> to vector<1x32x256xf32>
    tpu.vector_store %arg6[%c0_9, %c0_10, %c0_11], %15 {strides = array<i32>} : memref<1x32x256xf32, #tpu.memory_space<vmem>>, vector<1x32x256xf32>,
    return
  }
  func.func @transform_0(%arg0: i32, %arg1: i32) -> (i32, i32, i32) {
    %c0_i32 = arith.constant 0 : i32
    %c0_i32_0 = arith.constant 0 : i32
    return %arg0, %c0_i32, %arg1 : i32, i32, i32
  }
  func.func @transform_1(%arg0: i32, %arg1: i32) -> (i32, i32, i32) {
    %c0_i32 = arith.constant 0 : i32
    %c0_i32_0 = arith.constant 0 : i32
    return %arg0, %c0_i32, %arg1 : i32, i32, i32
  }
  func.func @transform_2(%arg0: i32, %arg1: i32) -> (i32, i32) {
    %c0_i32 = arith.constant 0 : i32
    %c0_i32_0 = arith.constant 0 : i32
    %c0_i32_1 = arith.constant 0 : i32
    return %c0_i32, %c0_i32_0 : i32, i32
  }
  func.func @transform_3(%arg0: i32, %arg1: i32) -> (i32, i32) {
    %c0_i32 = arith.constant 0 : i32
    %c0_i32_0 = arith.constant 0 : i32
    %c0_i32_1 = arith.constant 0 : i32
    return %c0_i32, %c0_i32_0 : i32, i32
  }
  func.func @transform_4(%arg0: i32, %arg1: i32) -> (i32, i32, i32) {
    %c0_i32 = arith.constant 0 : i32
    %c0_i32_0 = arith.constant 0 : i32
    return %arg0, %c0_i32, %arg1 : i32, i32, i32
  }
}

</mosaic_0001>

<bundles_post_ra>
// kernel: bottleneck_forward.4
= control target key start
LH: loop header
LB: loop body
LE: loop exit
PB: predicated region body
PF: predicated region fallthrough
CT: control target
= control target key end

     0   :  { %s498_s12 = smov 0   ;;  %s500_s13 = smov 0   ;;  %s542_s0 = inlined_call_operand.vmem [shape: f32[2,32,256], index: 0, kind: input, shape index: {}]   ;;  %s543_s1 = inlined_call_operand.vmem [shape: f32[8,32], index: 1, kind: input, shape index: {}]   ;;  %s544_s2 = inlined_call_operand.vmem [shape: f32[2,8,256], index: 2, kind: output, shape index: {0}]   ;;  %s545_s3 = inlined_call_operand.vmem [shape: f32[2,8,2], index: 3, kind: output, shape index: {1}]  }
   0x1   :  { %s502_s14 = smov 0  }
   0x2 LB: > { %s26_s15 = sadd.s32 1, %s472_s13  ;;  %p418_p0 = scmp.ge.s32.totalorder %s476_s14, 1  ;;  %s476_s14 = sphi %s502_s14, %s14_s14   ;;  %s472_s13 = sphi %s500_s13, %s547_s13   ;;  %s468_s12 = sphi %s498_s12, %s546_s12  }
   0x3   : > { %p28_p1 = scmp.ge.s32.totalorder %s26_s15, 2  ;;  %p163_p2 = scmp.lt.s32.totalorder %s476_s14, 3 }
   0x5   : > { %s549_s15 = smov (%p28_p1, %s26_s15), 0  ;;  %p164_p3 = pnand %p418_p0, %p163_p2 }
   0x6   : > { %p201_p4 = scmp.lt.s32.totalorder (!%p164_p3), %s468_s12, 1 }
   0x7   : > { %167 = sbr.rel (%p164_p3) target bundleno = 276 (0x114), region = 28 }
   0xc   : > { %s551_s12 = smov (!%p201_p4, %s468_s12), 1  ;;  %v234_v8 = vld [vmem:[%s543_s1] sm:$0xff]  ;;  %vm235_vm0 = vcmask 261120   ;;  %vm284_vm1 = vcmask 7168   ;;  %vm291_vm2 = vcmask 15368  }
   0xd   : > { %s428_s16 = sshll.u32 %s551_s12, 6  ;;  %s429_s22 = sshll.u32 %s551_s12, 4 }
   0xe   : > { %s208_s19 = scalar_lea.vmem %s542_s0, %s428_s16  ;;  %s218_s25 = scalar_lea.vmem %s544_s2, %s429_s22 }
   0xf   : > { %v232_v0 = vld [vmem:[%s208_s19 + $0x30] sm:$0xff]  ;;  %v233_v1 = vld [vmem:[%s208_s19 + $0x38] sm:$0xff]  ;;  %v230_v2 = vld [vmem:[%s208_s19 + $0x20] sm:$0xff]  ;;  %s423_s26 = sshll.u32 %s551_s12, 3 }
  0x10   : > { %251 = vmatpush.msra.mxu0 %v232_v0  ;;  %271 = vmatpush.msra.mxu1 %v233_v1  ;;  %v231_v3 = vld [vmem:[%s208_s19 + $0x28] sm:$0xff]  ;;  %v228_v4 = vld [vmem:[%s208_s19 + $0x10] sm:$0xff]  ;;  %v229_v5 = vld [vmem:[%s208_s19 + $0x18] sm:$0xff]  ;;  %s224_s29 = scalar_lea.vmem %s545_s3, %s423_s26 }
  0x11   : > { %v226_v6 = vld [vmem:[%s208_s19] sm:$0xff]  ;;  %v227_v7 = vld [vmem:[%s208_s19 + $0x8] sm:$0xff] }
  0x12   : > { %252 = vmatpush.msra.mxu0 %v230_v2  ;;  %272 = vmatpush.msra.mxu1 %v231_v3 }
  0x14   : > { %253 = vmatpush.msra.mxu0 %v228_v4  ;;  %273 = vmatpush.msra.mxu1 %v229_v5 }
  0x16   : > { %254 = vmatpush.msra.mxu0 %v226_v6  ;;  %274 = vmatpush.msra.mxu1 %v227_v7 }
  0x17   : > { %424 = vmatmul.msk.f32.vlgmr.msra.gmra.mxu0 %vm235_vm0, %v234_v8  ;;  %425 = vmatmul.msk.f32.vlgmr.msra.gmra.mxu1 %vm235_vm0, %v234_v8 }
  0x94   : > { %v256_v9 = vpop.f32.mrf.mxu0  ;;  %v276_v10 = vpop.f32.mrf.mxu1 }
  0x95   : > { %279 = vst [vmem:[%s218_s25] sm:$0xff] %v256_v9  ;;  %v281_v11 = vadd.f32 %v276_v10, %v256_v9  ;;  %v286_v12 = vmul.f32 %v256_v9, %v256_v9  ;;  %v287_v13 = vmul.f32 %v276_v10, %v276_v10 }
  0x96   : > { %280 = vst [vmem:[%s218_s25 + $0x8] sm:$0xff] %v276_v10 }
  0x97   : > { %282 = vadd.xlane.f32.xlu0 %v281_v11  ;;  %v288_v14 = vadd.f32 %v287_v13, %v286_v12 }
  0x9f   : > { %289 = vadd.xlane.f32.xlu0 %v288_v14 }
 0x10a   : > { %v283_v15 = vpop.xlane.xlu0 %282 }
 0x10b   : > { %285 = vst.msk [vmem:[%s224_s29] sm:$0xff] %vm284_vm1, %v283_v15 }
 0x112   : > { %v290_v16 = vpop.xlane.xlu0 %289 }
 0x113   : > { %292 = vst.msk [vmem:[%s224_s29] sm:$0xff] %vm291_vm2, %v290_v16 }
 0x114 PF: > { %s14_s14 = sadd.s32 1, %s476_s14   ;;  %s546_s12 = smov %s472_s13 }
 0x115   : > { %p11_p5 = scmp.ge.s32.totalorder %s14_s14, 4   ;;  %s547_s13 = smov %s549_s15 }
 0x117   :  { %13 = sbr.rel (!%p11_p5) target bundleno = 2 (0x2), region = 70 }

// kernel: bottleneck_forward.6
= control target key start
LH: loop header
LB: loop body
LE: loop exit
PB: predicated region body
PF: predicated region fallthrough
CT: control target
= control target key end

     0   :  { %s657_s18 = smov 0   ;;  %s659_s19 = smov 0   ;;  %s716_s0 = inlined_call_operand.vmem [shape: f32[2,8,256], index: 0, kind: input, shape index: {}]   ;;  %s717_s1 = inlined_call_operand.vmem [shape: f32[32,8], index: 1, kind: input, shape index: {}]   ;;  %s718_s2 = inlined_call_operand.vmem [shape: f32[8,1], index: 2, kind: input, shape index: {}]   ;;  %s719_s3 = inlined_call_operand.vmem [shape: f32[8,1], index: 3, kind: input, shape index: {}]   ;;  %s720_s4 = inlined_call_operand.vmem [shape: f32[2,32,256], index: 4, kind: output, shape index: {0}]   ;;  %s721_s5 = inlined_call_operand.vmem [shape: f32[2,32,2], index: 5, kind: output, shape index: {1}]  }
   0x1   :  { %s661_s20 = smov 0  }
   0x2 LB: > { %s28_s21 = sadd.s32 1, %s620_s19  ;;  %p554_p0 = scmp.ge.s32.totalorder %s624_s20, 1  ;;  %s624_s20 = sphi %s661_s20, %s16_s20   ;;  %s620_s19 = sphi %s659_s19, %s723_s19   ;;  %s616_s18 = sphi %s657_s18, %s722_s18  }
   0x3   : > { %p30_p1 = scmp.ge.s32.totalorder %s28_s21, 2  ;;  %p213_p2 = scmp.lt.s32.totalorder %s624_s20, 3 }
   0x5   : > { %s725_s21 = smov (%p30_p1, %s28_s21), 0  ;;  %p214_p3 = pnand %p554_p0, %p213_p2 }
   0x6   : > { %p256_p4 = scmp.lt.s32.totalorder (!%p214_p3), %s616_s18, 1 }
   0x7   : > { %217 = sbr.rel (%p214_p3) target bundleno = 413 (0x19d), region = 36 }
   0xc   : > { %v284_v0 = vld [vmem:[%s718_s2] sm:$0xff]  ;;  %v626_v1 = vmov 0   ;;  %s727_s18 = smov (!%p256_p4, %s616_s18), 1  ;;  %vm306_vm0 = vcmask 64512   ;;  %v304_v14 = vld [vmem:[%s717_s1 + $0x10] sm:$0xff]  ;;  %v303_v15 = vld [vmem:[%s717_s1 + $0x8] sm:$0xff] }
   0xd   : > { %601 = vset.pattern.permute.xlu0 %v626_v1  ;;  %v292_v2 = vld [vmem:[%s719_s3] sm:$0xff]  ;;  %s571_s26 = sshll.u32 %s727_s18, 4  ;;  %v305_v16 = vld [vmem:[%s717_s1 + $0x18] sm:$0xff]  ;;  %s572_s13 = sshll.u32 %s727_s18, 6  ;;  %vm397_vm1 = vcmask 7168   ;;  %vm422_vm2 = vcmask 15368  }
   0xe   : > { %287 = vperm.xlu0 %601, %v284_v0   ;;  %s263_s29 = scalar_lea.vmem %s716_s0, %s571_s26  ;;  %v302_v13 = vld [vmem:[%s717_s1] sm:$0xff]  ;;  %s273_s16 = scalar_lea.vmem %s720_s4, %s572_s13 }
   0xf   : > { %v282_v4 = vld [vmem:[%s263_s29] sm:$0xff]  ;;  %v283_v5 = vld [vmem:[%s263_s29 + $0x8] sm:$0xff]  ;;  %s573_s17 = sshll.u32 %s727_s18, 5 }
  0x10   : > { %s280_s24 = scalar_lea.vmem %s721_s5, %s573_s17 }
  0x16   : > { %295 = vperm.xlu0 %601, %v292_v2  }
  0x80   : > { %v288_v3 = vpop.permute.xlu0 %287 }
  0x81   : > { %v290_v6 = vmul.f32 %v288_v3, %v282_v4  ;;  %v291_v7 = vmul.f32 %v288_v3, %v283_v5 }
  0x88   : > { %v296_v8 = vpop.permute.xlu0 %295 }
  0x89   : > { %v298_v9 = vadd.f32 %v296_v8, %v290_v6  ;;  %v299_v10 = vadd.f32 %v296_v8, %v291_v7 }
  0x8b   : > { %v300_v11 = vmax.f32 %v298_v9, 0.0  ;;  %v301_v12 = vmax.f32 %v299_v10, 0.0 }
  0x8d   : > { %334 = vmatpush.msra.mxu0 %v300_v11  ;;  %574 = vmatpush.msra.mxu2 %v300_v11 }
  0x8e   : > { %363 = vmatpush.msra.mxu1 %v301_v12  ;;  %575 = vmatpush.msra.mxu3 %v301_v12 }
  0x8f   : > { %561 = vmatmul.msk.f32.vlgmr.msra.gmra.mxu0 %vm306_vm0, %v302_v13  ;;  %563 = vmatmul.msk.f32.vlgmr.msra.gmra.mxu2 %vm306_vm0, %v304_v14 }
  0x90   : > { %565 = vmatmul.msk.f32.vlgmr.msra.gmra.mxu1 %vm306_vm0, %v302_v13  ;;  %567 = vmatmul.msk.f32.vlgmr.msra.gmra.mxu3 %vm306_vm0, %v304_v14 }
  0x97   : > { %562 = vmatmul.msk.f32.gmra.mxu0 %vm306_vm0, %v303_v15  ;;  %564 = vmatmul.msk.f32.gmra.mxu2 %vm306_vm0, %v305_v16 }
  0x98   : > { %566 = vmatmul.msk.f32.gmra.mxu1 %vm306_vm0, %v303_v15  ;;  %568 = vmatmul.msk.f32.gmra.mxu3 %vm306_vm0, %v305_v16 }
 0x10c   : > { %v336_v17 = vpop.f32.mrf.mxu0 }
 0x10d   : > { %377 = vst [vmem:[%s273_s16] sm:$0xff] %v336_v17  ;;  %v365_v18 = vpop.f32.mrf.mxu1  ;;  %v402_v19 = vmul.f32 %v336_v17, %v336_v17 }
 0x10e   : > { %378 = vst [vmem:[%s273_s16 + $0x8] sm:$0xff] %v365_v18  ;;  %v385_v20 = vadd.f32 %v365_v18, %v336_v17  ;;  %v403_v21 = vmul.f32 %v365_v18, %v365_v18 }
 0x110   : > { %386 = vadd.xlane.f32.xlu1 %v385_v20  ;;  %v410_v22 = vadd.f32 %v403_v21, %v402_v19 }
 0x112   : > { %411 = vadd.xlane.f32.xlu0 %v410_v22  ;;  %v342_v23 = vpop.f32.mrf.mxu2 }
 0x113   : > { %381 = vst [vmem:[%s273_s16 + $0x20] sm:$0xff] %v342_v23  ;;  %v371_v24 = vpop.f32.mrf.mxu3  ;;  %v406_v35 = vmul.f32 %v342_v23, %v342_v23 }
 0x114   : > { %382 = vst [vmem:[%s273_s16 + $0x28] sm:$0xff] %v371_v24  ;;  %v339_v25 = vpop.f32.mrf.mxu0  ;;  %v391_v26 = vadd.f32 %v371_v24, %v342_v23  ;;  %v407_v36 = vmul.f32 %v371_v24, %v371_v24 }
 0x115   : > { %379 = vst [vmem:[%s273_s16 + $0x10] sm:$0xff] %v339_v25  ;;  %v368_v27 = vpop.f32.mrf.mxu1  ;;  %v404_v29 = vmul.f32 %v339_v25, %v339_v25 }
 0x116   : > { %380 = vst [vmem:[%s273_s16 + $0x18] sm:$0xff] %v368_v27  ;;  %392 = vadd.xlane.f32.xlu2 %v391_v26  ;;  %v388_v28 = vadd.f32 %v368_v27, %v339_v25  ;;  %v405_v30 = vmul.f32 %v368_v27, %v368_v27  ;;  %v416_v39 = vadd.f32 %v407_v36, %v406_v35 }
 0x118   : > { %389 = vadd.xlane.f32.xlu1 %v388_v28  ;;  %v413_v34 = vadd.f32 %v405_v30, %v404_v29 }
 0x11a   : > { %v345_v31 = vpop.f32.mrf.mxu2 }
 0x11b   : > { %383 = vst [vmem:[%s273_s16 + $0x30] sm:$0xff] %v345_v31  ;;  %v374_v32 = vpop.f32.mrf.mxu3  ;;  %v408_v37 = vmul.f32 %v345_v31, %v345_v31 }
 0x11c   : > { %384 = vst [vmem:[%s273_s16 + $0x38] sm:$0xff] %v374_v32  ;;  %v394_v33 = vadd.f32 %v374_v32, %v345_v31  ;;  %v409_v38 = vmul.f32 %v374_v32, %v374_v32 }
 0x11e   : > { %395 = vadd.xlane.f32.xlu2 %v394_v33  ;;  %v419_v40 = vadd.f32 %v409_v38, %v408_v37 }
 0x120   : > { %414 = vadd.xlane.f32.xlu1 %v413_v34 }
 0x126   : > { %417 = vadd.xlane.f32.xlu2 %v416_v39 }
 0x128   : > { %420 = vadd.xlane.f32.xlu1 %v419_v40 }
 0x183   : > { %v387_v41 = vpop.xlane.xlu1 %386 }
 0x184   : > { %398 = vst.msk [vmem:[%s280_s24] sm:$0xff] %vm397_vm1, %v387_v41 }
 0x185   : > { %v412_v42 = vpop.xlane.xlu0 %411 }
 0x186   : > { %423 = vst.msk [vmem:[%s280_s24] sm:$0xff] %vm422_vm2, %v412_v42 }
 0x189   : > { %v393_v43 = vpop.xlane.xlu2 %392 }
 0x18a   : > { %400 = vst.msk [vmem:[%s280_s24 + $0x10] sm:$0xff] %vm397_vm1, %v393_v43 }
 0x18b   : > { %v390_v44 = vpop.xlane.xlu1 %389 }
 0x18c   : > { %399 = vst.msk [vmem:[%s280_s24 + $0x8] sm:$0xff] %vm397_vm1, %v390_v44 }
 0x191   : > { %v396_v45 = vpop.xlane.xlu2 %395 }
 0x192   : > { %401 = vst.msk [vmem:[%s280_s24 + $0x18] sm:$0xff] %vm397_vm1, %v396_v45 }
 0x193   : > { %v415_v46 = vpop.xlane.xlu1 %414 }
 0x194   : > { %424 = vst.msk [vmem:[%s280_s24 + $0x8] sm:$0xff] %vm422_vm2, %v415_v46 }
 0x199   : > { %v418_v47 = vpop.xlane.xlu2 %417 }
 0x19a   : > { %425 = vst.msk [vmem:[%s280_s24 + $0x10] sm:$0xff] %vm422_vm2, %v418_v47 }
 0x19b   : > { %v421_v48 = vpop.xlane.xlu1 %420 }
 0x19c   : > { %426 = vst.msk [vmem:[%s280_s24 + $0x18] sm:$0xff] %vm422_vm2, %v421_v48 }
 0x19d PF: > { %s16_s20 = sadd.s32 1, %s624_s20   ;;  %s722_s18 = smov %s620_s19 }
 0x19e   : > { %p13_p5 = scmp.ge.s32.totalorder %s16_s20, 4   ;;  %s723_s19 = smov %s725_s21 }
 0x1a0   :  { %15 = sbr.rel (!%p13_p5) target bundleno = 2 (0x2), region = 78 }

// kernel: bottleneck_forward.5
= control target key start
LH: loop header
LB: loop body
LE: loop exit
PB: predicated region body
PF: predicated region fallthrough
CT: control target
= control target key end

     0   :  { %s1019_s18 = smov 0   ;;  %s1158_s0 = inlined_call_operand.vmem [shape: f32[2,8,256], index: 0, kind: input, shape index: {}]   ;;  %s1159_s1 = inlined_call_operand.vmem [shape: f32[9,8,8], index: 1, kind: input, shape index: {}]   ;;  %s1160_s2 = inlined_call_operand.vmem [shape: f32[8,1], index: 2, kind: input, shape index: {}]   ;;  %s1161_s3 = inlined_call_operand.vmem [shape: f32[8,1], index: 3, kind: input, shape index: {}]   ;;  %s1162_s4 = inlined_call_operand.vmem [shape: f32[2,8,256], index: 4, kind: output, shape index: {0}]   ;;  %s1163_s5 = inlined_call_operand.vmem [shape: f32[2,8,2], index: 5, kind: output, shape index: {1}]  }
   0x1 LB: > { %s899_s19 = sadd.s32 4294967295, %s978_s18   ;;  %p903_p0 = scmp.ge.s32.totalorder %s978_s18, 1  ;;  %s978_s18 = sphi %s1019_s18, %s16_s18  }
   0x2   : > { %p190_p1 = scmp.lt.s32.totalorder %s978_s18, 3 }
   0x4   : > { %p191_p2 = pnand %p903_p0, %p190_p1 }
   0x5   : > { %p222_p3 = scmp.lt.s32.totalorder (!%p191_p2), %s899_s19, 1  ;;  %s981_s28 = smov (!%p191_p2), 15  }
   0x6   : > { %194 = sbr.rel (%p191_p2) target bundleno = 548 (0x224), region = 36  ;;  %s982_s29 = smov (!%p191_p2), 16  }
   0x7   : > { %s983_s30 = smov (!%p191_p2), 17   ;;  %s984_s6 = smov (!%p191_p2), 1  }
   0x8   : > { %s985_s7 = smov (!%p191_p2), 113   ;;  %s986_s8 = smov (!%p191_p2), 112  }
   0x9   : > { %s987_s9 = smov (!%p191_p2), 127   ;;  %s988_s10 = smov (!%p191_p2), 111  }
   0xb   : > { %v238_v0 = vld [vmem:[%s1160_s2] sm:$0xff]  ;;  %v980_v1 = vmov 0   ;;  %s1173_s19 = smov (!%p222_p3, %s899_s19), 1  ;;  %vm309_vm0 = vcmask 130048   ;;  %v909_v13 = vld [vmem:[%s1159_s1 + $0x8] sm:$0xff]  ;;  %vm316_vm2 = vcmask 64512   ;;  %v256_v17 = vlaneseq }
   0xc   : > { %971 = vset.pattern.permute.xlu0 %v980_v1  ;;  %v246_v2 = vld [vmem:[%s1161_s3] sm:$0xff]  ;;  %s952_s24 = sshll.u32 %s1173_s19, 4  ;;  %vm910_vm1 = vmneg %vm309_vm0  ;;  %vm407_vm3 = vcmask 121856   ;;  %vm293_vm4 = vcmask 138240   ;;  %vm469_vm7 = vcmask 7168   ;;  %v918_v27 = vld [vmem:[%s1159_s1 + $0x10] sm:$0xff] }
   0xd   : > { %241 = vperm.xlu0 %971, %v238_v0   ;;  %s226_s27 = scalar_lea.vmem %s1158_s0, %s952_s24  ;;  %v257_v18 = vand.u32 127, %v256_v17  ;;  %v304_v29 = vld [vmem:[%s1159_s1] sm:$0xff]  ;;  %vm574_vm9 = vcmask 1039360   ;;  %v923_v39 = vld [vmem:[%s1159_s1 + $0x18] sm:$0xff]  ;;  %vm690_vm11 = vcmask 916480   ;;  %v931_v48 = vld [vmem:[%s1159_s1 + $0x28] sm:$0xff] }
   0xe   : > { %v236_v4 = vld [vmem:[%s226_s27] sm:$0xff]  ;;  %v237_v8 = vld [vmem:[%s226_s27 + $0x8] sm:$0xff]  ;;  %vm632_vm12 = vcmask 924672   ;;  %v936_v52 = vld [vmem:[%s1159_s1 + $0x30] sm:$0xff]  ;;  %vm746_vm13 = vcmask 908288   ;;  %vm811_vm14 = vcmask 15368  }
   0xf   : > { %v263_v19 = vand.u32 15, %v257_v18  ;;  %v258_v24 = vadd.s32 128, %v257_v18  ;;  %v928_v35 = vld [vmem:[%s1159_s1 + $0x20] sm:$0xff]  ;;  %v941_v56 = vld [vmem:[%s1159_s1 + $0x38] sm:$0xff] }
  0x10   : > { %v945_v59 = vld [vmem:[%s1159_s1 + $0x40] sm:$0xff] }
  0x11   : > { %vm1056_vm5 = vcmp.lt.s32.totalorder %v263_v19, 15  ;;  %vm1060_vm6 = vcmp.gt.s32.totalorder %v263_v19, 0  ;;  %v270_v31 = vand.u32 15, %v258_v24 }
  0x13   : > { %vm1081_vm8 = vcmp.gt.s32.totalorder %v270_v31, 0  ;;  %vm1095_vm10 = vcmp.lt.s32.totalorder %v270_v31, 15 }
  0x15   : > { %249 = vperm.xlu0 %971, %v246_v2  }
  0x7f   : > { %v242_v3 = vpop.permute.xlu0 %241 }
  0x80   : > { %v244_v5 = vmul.f32 %v242_v3, %v236_v4  ;;  %v245_v10 = vmul.f32 %v242_v3, %v237_v8 }
  0x87   : > { %v250_v6 = vpop.permute.xlu0 %249 }
  0x88   : > { %v252_v7 = vadd.f32 %v250_v6, %v244_v5  ;;  %v253_v11 = vadd.f32 %v250_v6, %v245_v10 }
  0x8a   : > { %v254_v9 = vmax.f32 %v252_v7, 0.0  ;;  %v1041_v12 = vmax.f32 %v253_v11, 0.0 }
  0x8c   : > { %403 = vrot.lane.b32.xlu0 %v254_v9, %s981_s28  ;;  %305 = vrot.lane.b32.xlu2 %v254_v9, %s982_s29 }
  0x8d   : > { %289 = vrot.lane.b32.xlu1 %v254_v9, %s983_s30 }
  0x94   : > { %467 = vrot.lane.b32.xlu0 %v1041_v12, %s984_s6  ;;  %307 = vrot.lane.b32.xlu2 %v1041_v12, %s982_s29 }
  0x95   : > { %291 = vrot.lane.b32.xlu1 %v1041_v12, %s983_s30 }
  0x9c   : > { %628 = vrot.lane.b32.xlu0 %v254_v9, %s985_s7  ;;  %465 = vrot.lane.b32.xlu2 %v254_v9, %s984_s6 }
  0x9d   : > { %405 = vrot.lane.b32.xlu1 %v1041_v12, %s981_s28 }
  0xa4   : > { %688 = vrot.lane.b32.xlu0 %v1041_v12, %s986_s8  ;;  %572 = vrot.lane.b32.xlu2 %v1041_v12, %s987_s9 }
  0xa5   : > { %570 = vrot.lane.b32.xlu1 %v254_v9, %s987_s9  ;;  %s231_s9 = scalar_lea.vmem %s1162_s4, %s952_s24 }
  0xac   : > { %686 = vrot.lane.b32.xlu2 %v254_v9, %s986_s8 }
  0xad   : > { %630 = vrot.lane.b32.xlu1 %v1041_v12, %s985_s7 }
  0xb4   : > { %744 = vrot.lane.b32.xlu2 %v1041_v12, %s988_s10 }
  0xb5   : > { %742 = vrot.lane.b32.xlu1 %v254_v9, %s988_s10  ;;  %s908_s10 = sshll.u32 %s1173_s19, 3 }
  0xb6   : > { %s235_s13 = scalar_lea.vmem %s1163_s5, %s908_s10 }
  0xe6   : > { %v306_v14 = vpop.permute.xlu2 %305 }
  0xe7   : > { %911 = vmatpush.msk.msra.mxu0 %vm910_vm1, %v306_v14 }
  0xe8   : > { %912 = vmatmul.msk.f32.vlgmr.msra.gmra.mxu0 %vm316_vm2, %v909_v13 }
  0xee   : > { %v308_v15 = vpop.permute.xlu2 %307 }
  0xef   : > { %v310_v16 = vsel %vm309_vm0, %v306_v14, %v308_v15 }
  0xf0   : > { %355 = vmatpush.msra.mxu1 %v310_v16 }
  0xf1   : > { %913 = vmatmul.msk.f32.vlgmr.msra.gmra.mxu1 %vm316_vm2, %v909_v13 }
  0xf6   : > { %v466_v21 = vpop.permute.xlu2 %465 }
  0xf7   : > { %v473_v30 = vsel %vm469_vm7, 0.0, %v466_v21 }
  0xfe   : > { %v404_v22 = vpop.permute.xlu0 %403  ;;  %v573_v36 = vpop.permute.xlu2 %572 }
  0xff   : > { %v290_v25 = vpop.permute.xlu1 %289  ;;  %v411_v26 = vsel %vm407_vm3, 0.0, %v404_v22  ;;  %v578_v41 = vsel %vm574_vm9, %v573_v36, 0.0 }
 0x100   : > { %v297_v28 = vsel %vm293_vm4, 0.0, %v290_v25  ;;  %919 = vmatpush.msk.msrb.mxu0 %vm1056_vm5, %v411_v26 }
 0x101   : > { %914 = vmatpush.msk.msra.mxu2 %vm1060_vm6, %v297_v28  ;;  %920 = vmatmul.msk.f32.vlgmr.msrb.gmra.mxu0 %vm316_vm2, %v918_v27 }
 0x102   : > { %543 = vmatpush.msra.mxu0 %v254_v9  ;;  %915 = vmatmul.msk.f32.vlgmr.msra.gmra.mxu2 %vm316_vm2, %v304_v29 }
 0x103   : > { %924 = vmatpush.msk.msrb.mxu2 %vm1060_vm6, %v473_v30 }
 0x106   : > { %v468_v32 = vpop.permute.xlu0 %467  ;;  %v687_v45 = vpop.permute.xlu2 %686 }
 0x107   : > { %v292_v34 = vpop.permute.xlu1 %291  ;;  %v470_v38 = vsel %vm469_vm7, %v466_v21, %v468_v32 }
 0x108   : > { %v294_v37 = vsel %vm293_vm4, %v290_v25, %v292_v34 }
 0x109   : > { %916 = vmatpush.msk.msra.mxu3 %vm1081_vm8, %v294_v37  ;;  %929 = vmatmul.msk.f32.vlgmr.msra.gmra.mxu0 %vm316_vm2, %v928_v35 }
 0x10a   : > { %917 = vmatmul.msk.f32.vlgmr.msra.gmra.mxu3 %vm316_vm2, %v304_v29  ;;  %925 = vmatmul.msk.f32.vlgmr.msrb.gmra.mxu2 %vm316_vm2, %v923_v39 }
 0x10b   : > { %926 = vmatpush.msk.msrb.mxu3 %vm1081_vm8, %v470_v38 }
 0x10d   : > { %934 = vmatpush.msk.msra.mxu3 %vm1095_vm10, %v578_v41 }
 0x10e   : > { %v629_v42 = vpop.permute.xlu0 %628  ;;  %v745_v53 = vpop.permute.xlu2 %744 }
 0x10f   : > { %v406_v43 = vpop.permute.xlu1 %405  ;;  %v750_v57 = vsel %vm746_vm13, %v745_v53, 0.0 }
 0x110   : > { %v408_v44 = vsel %vm407_vm3, %v404_v22, %v406_v43 }
 0x111   : > { %921 = vmatpush.msk.msrb.mxu1 %vm1095_vm10, %v408_v44 }
 0x112   : > { %922 = vmatmul.msk.f32.vlgmr.msrb.gmra.mxu1 %vm316_vm2, %v918_v27  ;;  %927 = vmatmul.msk.f32.vlgmr.msrb.gmra.mxu3 %vm316_vm2, %v923_v39 }
 0x113   : > { %563 = vmatpush.msra.mxu1 %v1041_v12 }
 0x116   : > { %v689_v46 = vpop.permute.xlu0 %688 }
 0x117   : > { %v571_v47 = vpop.permute.xlu1 %570  ;;  %943 = vmatpush.msk.msrb.mxu3 %vm690_vm11, %v689_v46  ;;  %v691_v49 = vsel %vm690_vm11, %v687_v45, %v689_v46 }
 0x118   : > { %v575_v50 = vsel %vm574_vm9, %v571_v47, %v573_v36 }
 0x119   : > { %932 = vmatpush.msk.msra.mxu2 %vm1056_vm5, %v575_v50 }
 0x11a   : > { %930 = vmatmul.msk.f32.vlgmr.msra.gmra.mxu1 %vm316_vm2, %v928_v35  ;;  %933 = vmatmul.msk.f32.vlgmr.msra.gmra.mxu2 %vm316_vm2, %v931_v48 }
 0x11b   : > { %935 = vmatmul.msk.f32.vlgmr.msra.gmra.mxu3 %vm316_vm2, %v931_v48  ;;  %715 = vmatpush.msrb.mxu2 %v691_v49 }
 0x11f   : > { %v631_v51 = vpop.permute.xlu1 %630 }
 0x120   : > { %v633_v54 = vsel %vm632_vm12, %v629_v42, %v631_v51  ;;  %v636_v55 = vsel %vm632_vm12, %v631_v51, 0.0 }
 0x121   : > { %937 = vmatpush.msk.msrb.mxu0 %vm1060_vm6, %v633_v54  ;;  %939 = vmatpush.msk.msrb.mxu1 %vm1081_vm8, %v636_v55 }
 0x122   : > { %938 = vmatmul.msk.f32.vlgmr.msrb.gmra.mxu0 %vm316_vm2, %v936_v52  ;;  %940 = vmatmul.msk.f32.vlgmr.msrb.gmra.mxu1 %vm316_vm2, %v936_v52 }
 0x123   : > { %942 = vmatmul.msk.f32.vlgmr.msrb.gmra.mxu2 %vm316_vm2, %v941_v56  ;;  %944 = vmatmul.msk.f32.vlgmr.msrb.gmra.mxu3 %vm316_vm2, %v941_v56 }
 0x124   : > { %948 = vmatpush.msk.msra.mxu1 %vm1095_vm10, %v750_v57 }
 0x127   : > { %v743_v58 = vpop.permute.xlu1 %742 }
 0x128   : > { %v747_v60 = vsel %vm746_vm13, %v743_v58, %v745_v53 }
 0x129   : > { %946 = vmatpush.msk.msra.mxu0 %vm1056_vm5, %v747_v60 }
 0x12a   : > { %947 = vmatmul.msk.f32.vlgmr.msra.gmra.mxu0 %vm316_vm2, %v945_v59  ;;  %949 = vmatmul.msk.f32.vlgmr.msra.gmra.mxu1 %vm316_vm2, %v945_v59 }
 0x165   : > { %v337_v61 = vpop.f32.mrf.mxu0 }
 0x16e   : > { %v357_v62 = vpop.f32.mrf.mxu1 }
 0x17e   : > { %v440_v0 = vpop.f32.mrf.mxu0 }
 0x185   : > { %v380_v63 = vpop.f32.mrf.mxu2 }
 0x186   : > { %v381_v3 = vadd.f32 %v380_v63, %v337_v61  ;;  %v545_v7 = vpop.f32.mrf.mxu0 }
 0x188   : > { %v463_v9 = vadd.f32 %v440_v0, %v381_v3 }
 0x18d   : > { %v400_v1 = vpop.f32.mrf.mxu3  ;;  %v498_v5 = vpop.f32.mrf.mxu2 }
 0x18e   : > { %v401_v4 = vadd.f32 %v400_v1, %v357_v62  ;;  %v521_v11 = vadd.f32 %v498_v5, %v463_v9 }
 0x18f   : > { %v460_v2 = vpop.f32.mrf.mxu1 }
 0x190   : > { %v464_v10 = vadd.f32 %v460_v2, %v401_v4  ;;  %v568_v15 = vadd.f32 %v545_v7, %v521_v11 }
 0x195   : > { %v518_v6 = vpop.f32.mrf.mxu3 }
 0x196   : > { %v522_v12 = vadd.f32 %v518_v6, %v464_v10 }
 0x197   : > { %v565_v8 = vpop.f32.mrf.mxu1 }
 0x198   : > { %v569_v16 = vadd.f32 %v565_v8, %v522_v12 }
 0x19d   : > { %v603_v13 = vpop.f32.mrf.mxu2 }
 0x19e   : > { %v623_v14 = vpop.f32.mrf.mxu3  ;;  %v626_v19 = vadd.f32 %v603_v13, %v568_v15 }
 0x19f   : > { %v661_v17 = vpop.f32.mrf.mxu0  ;;  %v681_v18 = vpop.f32.mrf.mxu1  ;;  %v627_v20 = vadd.f32 %v623_v14, %v569_v16 }
 0x1a0   : > { %v684_v21 = vadd.f32 %v661_v17, %v626_v19 }
 0x1a1   : > { %v685_v22 = vadd.f32 %v681_v18, %v627_v20 }
 0x1a6   : > { %v717_v23 = vpop.f32.mrf.mxu2  ;;  %v737_v24 = vpop.f32.mrf.mxu3 }
 0x1a7   : > { %v740_v25 = vadd.f32 %v717_v23, %v684_v21  ;;  %v741_v26 = vadd.f32 %v737_v24, %v685_v22  ;;  %v775_v27 = vpop.f32.mrf.mxu0  ;;  %v795_v28 = vpop.f32.mrf.mxu1 }
 0x1a9   : > { %v798_v29 = vadd.f32 %v775_v27, %v740_v25  ;;  %v799_v30 = vadd.f32 %v795_v28, %v741_v26 }
 0x1ab   : > { %800 = vst [vmem:[%s231_s9] sm:$0xff] %v798_v29  ;;  %v802_v31 = vadd.f32 %v799_v30, %v798_v29  ;;  %v806_v32 = vmul.f32 %v798_v29, %v798_v29  ;;  %v807_v33 = vmul.f32 %v799_v30, %v799_v30 }
 0x1ac   : > { %801 = vst [vmem:[%s231_s9 + $0x8] sm:$0xff] %v799_v30 }
 0x1ad   : > { %803 = vadd.xlane.f32.xlu0 %v802_v31  ;;  %v808_v34 = vadd.f32 %v807_v33, %v806_v32 }
 0x1af   : > { %809 = vadd.xlane.f32.xlu1 %v808_v34 }
 0x220   : > { %v804_v35 = vpop.xlane.xlu0 %803 }
 0x221   : > { %805 = vst.msk [vmem:[%s235_s13] sm:$0xff] %vm469_vm7, %v804_v35 }
 0x222   : > { %v810_v36 = vpop.xlane.xlu1 %809 }
 0x223   : > { %812 = vst.msk [vmem:[%s235_s13] sm:$0xff] %vm811_vm14, %v810_v36 }
 0x224 PF: > { %s16_s18 = sadd.s32 1, %s978_s18  }
 0x225   : > { %p13_p4 = scmp.ge.s32.totalorder %s16_s18, 4  }
 0x227   :  { %15 = sbr.rel (!%p13_p4) target bundleno = 1 (0x1), region = 86 }

// kernel: bottleneck_forward.7
= control target key start
LH: loop header
LB: loop body
LE: loop exit
PB: predicated region body
PF: predicated region fallthrough
CT: control target
= control target key end

     0   :  { %s576_s15 = smov 0   ;;  %s578_s16 = smov 0   ;;  %s670_s0 = inlined_call_operand.vmem [shape: f32[2,32,256], index: 0, kind: input, shape index: {}]   ;;  %s671_s1 = inlined_call_operand.vmem [shape: f32[2,32,256], index: 1, kind: input, shape index: {}]   ;;  %s672_s2 = inlined_call_operand.vmem [shape: f32[32,1], index: 2, kind: input, shape index: {}]   ;;  %s673_s3 = inlined_call_operand.vmem [shape: f32[32,1], index: 3, kind: input, shape index: {}]   ;;  %s674_s4 = inlined_call_operand.vmem [shape: f32[2,32,256], index: 4, kind: output, shape index: {}]  }
   0x1   :  { %s580_s17 = smov 0  }
   0x2 LB: > { %s26_s18 = sadd.s32 1, %s544_s16  ;;  %p486_p0 = scmp.ge.s32.totalorder %s548_s17, 1  ;;  %s548_s17 = sphi %s580_s17, %s14_s17   ;;  %s544_s16 = sphi %s578_s16, %s676_s16   ;;  %s540_s15 = sphi %s576_s15, %s675_s15  }
   0x3   : > { %p28_p1 = scmp.ge.s32.totalorder %s26_s18, 2  ;;  %p200_p2 = scmp.lt.s32.totalorder %s548_s17, 3 }
   0x5   : > { %s678_s18 = smov (%p28_p1, %s26_s18), 0  ;;  %p201_p3 = pnand %p486_p0, %p200_p2 }
   0x6   : > { %p244_p4 = scmp.lt.s32.totalorder (!%p201_p3), %s540_s15, 1 }
   0x7   : > { %204 = sbr.rel (%p201_p3) target bundleno = 155 (0x9b), region = 36 }
   0xc   : > { %v283_v0 = vld [vmem:[%s672_s2 + $0x10] sm:$0xff]  ;;  %v281_v1 = vld [vmem:[%s672_s2] sm:$0xff]  ;;  %v550_v2 = vmov 0   ;;  %v284_v4 = vld [vmem:[%s672_s2 + $0x18] sm:$0xff]  ;;  %s680_s15 = smov (!%p244_p4, %s540_s15), 1 }
   0xd   : > { %524 = vset.pattern.permute.xlu1 %v550_v2  ;;  %523 = vset.pattern.permute.xlu0 %v550_v2  ;;  %v313_v3 = vld [vmem:[%s673_s3] sm:$0xff]  ;;  %v282_v5 = vld [vmem:[%s672_s2 + $0x8] sm:$0xff]  ;;  %v316_v7 = vld [vmem:[%s673_s3 + $0x18] sm:$0xff]  ;;  %s495_s9 = sshll.u32 %s680_s15, 6 }
   0xe   : > { %297 = vperm.xlu1 %524, %v283_v0   ;;  %287 = vperm.xlu0 %523, %v281_v1   ;;  %v314_v6 = vld [vmem:[%s673_s3 + $0x8] sm:$0xff]  ;;  %v315_v8 = vld [vmem:[%s673_s3 + $0x10] sm:$0xff]  ;;  %s625_s12 = scalar_lea.vmem %s670_s0, %s495_s9  ;;  %s632_s19 = scalar_lea.vmem %s671_s1, %s495_s9 }
   0xf   : > { %525 = vset.pattern.permute.xlu2 %v550_v2  ;;  %v273_v9 = vld [vmem:[%s625_s12] sm:$0xff]  ;;  %v274_v10 = vld [vmem:[%s625_s12 + $0x8] sm:$0xff]  ;;  %s639_s21 = scalar_lea.vmem %s674_s4, %s495_s9  ;;  %v275_v22 = vld [vmem:[%s625_s12 + $0x10] sm:$0xff] }
  0x10   : > { %319 = vperm.xlu2 %525, %v313_v3   ;;  %v345_v16 = vld [vmem:[%s632_s19] sm:$0xff]  ;;  %v346_v17 = vld [vmem:[%s632_s19 + $0x8] sm:$0xff]  ;;  %v276_v23 = vld [vmem:[%s625_s12 + $0x18] sm:$0xff] }
  0x11   : > { %v347_v31 = vld [vmem:[%s632_s19 + $0x10] sm:$0xff]  ;;  %v348_v32 = vld [vmem:[%s632_s19 + $0x18] sm:$0xff]  ;;  %v277_v33 = vld [vmem:[%s625_s12 + $0x20] sm:$0xff] }
  0x12   : > { %v278_v34 = vld [vmem:[%s625_s12 + $0x28] sm:$0xff]  ;;  %v279_v37 = vld [vmem:[%s625_s12 + $0x30] sm:$0xff]  ;;  %v280_v38 = vld [vmem:[%s625_s12 + $0x38] sm:$0xff] }
  0x13   : > { %v351_v47 = vld [vmem:[%s632_s19 + $0x30] sm:$0xff]  ;;  %v352_v49 = vld [vmem:[%s632_s19 + $0x38] sm:$0xff]  ;;  %v349_v51 = vld [vmem:[%s632_s19 + $0x20] sm:$0xff] }
  0x14   : > { %v350_v52 = vld [vmem:[%s632_s19 + $0x28] sm:$0xff] }
  0x16   : > { %302 = vperm.xlu1 %524, %v284_v4   ;;  %292 = vperm.xlu0 %523, %v282_v5  }
  0x18   : > { %324 = vperm.xlu2 %525, %v314_v6  }
  0x1e   : > { %334 = vperm.xlu1 %524, %v316_v7   ;;  %329 = vperm.xlu0 %523, %v315_v8  }
  0x6a   : > { %v320_v11 = vpop.permute.xlu2 %319 }
  0x72   : > { %v325_v30 = vpop.permute.xlu2 %324 }
  0x80   : > { %v298_v12 = vpop.permute.xlu1 %297  ;;  %v288_v13 = vpop.permute.xlu0 %287 }
  0x81   : > { %v305_v14 = vmul.f32 %v288_v13, %v273_v9  ;;  %v306_v15 = vmul.f32 %v288_v13, %v274_v10  ;;  %v309_v41 = vmul.f32 %v298_v12, %v277_v33  ;;  %v310_v42 = vmul.f32 %v298_v12, %v278_v34 }
  0x83   : > { %v337_v18 = vadd.f32 %v320_v11, %v305_v14  ;;  %v338_v19 = vadd.f32 %v320_v11, %v306_v15 }
  0x85   : > { %v353_v20 = vadd.f32 %v345_v16, %v337_v18  ;;  %v354_v21 = vadd.f32 %v346_v17, %v338_v19 }
  0x87   : > { %v361_v24 = vmax.f32 %v353_v20, 0.0  ;;  %v362_v25 = vmax.f32 %v354_v21, 0.0 }
  0x88   : > { %v303_v26 = vpop.permute.xlu1 %302  ;;  %v293_v27 = vpop.permute.xlu0 %292 }
  0x89   : > { %369 = vst [vmem:[%s639_s21] sm:$0xff] %v361_v24  ;;  %v307_v28 = vmul.f32 %v293_v27, %v275_v22  ;;  %v308_v29 = vmul.f32 %v293_v27, %v276_v23  ;;  %v311_v43 = vmul.f32 %v303_v26, %v279_v37  ;;  %v312_v44 = vmul.f32 %v303_v26, %v280_v38 }
  0x8a   : > { %370 = vst [vmem:[%s639_s21 + $0x8] sm:$0xff] %v362_v25 }
  0x8b   : > { %v339_v35 = vadd.f32 %v325_v30, %v307_v28  ;;  %v340_v36 = vadd.f32 %v325_v30, %v308_v29 }
  0x8d   : > { %v355_v39 = vadd.f32 %v347_v31, %v339_v35  ;;  %v356_v40 = vadd.f32 %v348_v32, %v340_v36 }
  0x8f   : > { %v363_v45 = vmax.f32 %v355_v39, 0.0  ;;  %v364_v46 = vmax.f32 %v356_v40, 0.0 }
  0x90   : > { %v335_v48 = vpop.permute.xlu1 %334  ;;  %v330_v50 = vpop.permute.xlu0 %329 }
  0x91   : > { %371 = vst [vmem:[%s639_s21 + $0x10] sm:$0xff] %v363_v45  ;;  %v343_v53 = vadd.f32 %v335_v48, %v311_v43  ;;  %v344_v54 = vadd.f32 %v335_v48, %v312_v44  ;;  %v341_v55 = vadd.f32 %v330_v50, %v309_v41  ;;  %v342_v56 = vadd.f32 %v330_v50, %v310_v42 }
  0x92   : > { %372 = vst [vmem:[%s639_s21 + $0x18] sm:$0xff] %v364_v46 }
  0x93   : > { %v359_v57 = vadd.f32 %v351_v47, %v343_v53  ;;  %v360_v58 = vadd.f32 %v352_v49, %v344_v54  ;;  %v357_v59 = vadd.f32 %v349_v51, %v341_v55  ;;  %v358_v60 = vadd.f32 %v350_v52, %v342_v56 }
  0x95   : > { %v367_v61 = vmax.f32 %v359_v57, 0.0  ;;  %v368_v62 = vmax.f32 %v360_v58, 0.0  ;;  %v365_v63 = vmax.f32 %v357_v59, 0.0  ;;  %v366_v0 = vmax.f32 %v358_v60, 0.0 }
  0x97   : > { %375 = vst [vmem:[%s639_s21 + $0x30] sm:$0xff] %v367_v61 }
  0x98   : > { %376 = vst [vmem:[%s639_s21 + $0x38] sm:$0xff] %v368_v62 }
  0x99   : > { %373 = vst [vmem:[%s639_s21 + $0x20] sm:$0xff] %v365_v63 }
  0x9a   : > { %374 = vst [vmem:[%s639_s21 + $0x28] sm:$0xff] %v366_v0 }
  0x9b PF: > { %s14_s17 = sadd.s32 1, %s548_s17   ;;  %s675_s15 = smov %s544_s16 }
  0x9c   : > { %p11_p5 = scmp.ge.s32.totalorder %s14_s17, 4   ;;  %s676_s16 = smov %s678_s18 }
  0x9e   :  { %13 = sbr.rel (!%p11_p5) target bundleno = 2 (0x2), region = 69 }

</bundles_post_ra>
